<compile_context>
chip_gen: v6e
topology: v6e:2x2x1
jax: 0.10.0
libtpu: 0.0.40
codegen_flags: <defaults>
</compile_context>

<pallas_src>
import functools

import jax
import jax.numpy as jnp
from jax.experimental import pallas as pl
from jax.experimental.pallas import tpu as pltpu

KSIZE = 7
PAD = 3                      # padding for kernel_size == 7
NTAPS = KSIZE * KSIZE


def _conv7x7_two_in(avg, mx, w, col_mf, row_mf, H, W):
    """Separable-shift 2-in/1-out 7x7 conv over (bc, H*W) planes -> (bc, H*W).

    w:      list of 2*49 SMEM scalars, [cin, kh, kw] order (cin 0 = avg).
    col_mf: per-kw (1, HW) f32 0/1 destination-column validity mask (None at
            the center tap), shared by both planes and all kernel rows.
    row_mf: per-kh (1, HW) f32 0/1 destination-row validity mask.
    """
    HW = H * W

    # 1) column-shifted + column-masked variants: 6 rolls per plane.
    col_a, col_m = [], []
    for kw in range(KSIZE):
        dw = kw - PAD
        if dw == 0:
            col_a.append(avg)
            col_m.append(mx)
        else:
            shift = (-dw) % HW
            col_a.append(pltpu.roll(avg, shift, 1) * col_mf[kw])
            col_m.append(pltpu.roll(mx, shift, 1) * col_mf[kw])

    # 2) per kernel-row VALU FMA accumulation, then ONE row roll + row mask.
    acc = None
    for kh in range(KSIZE):
        dh = kh - PAD
        part = None
        for kw in range(KSIZE):
            tap = kh * KSIZE + kw
            term = w[tap] * col_a[kw] + w[NTAPS + tap] * col_m[kw]
            part = term if part is None else part + term
        if dh != 0:
            part = pltpu.roll(part, (-(dh * W)) % HW, 1) * row_mf[kh]
        acc = part if acc is None else acc + part
    return acc


def _spatial_attention_kernel(w_ref, s_ref, b_ref, x_ref, o_ref, *,
                              H, W, batch_chunk, c_chunk):
    """One grid step: a (block_b, C, H*W) slab.

    w_ref: (2*49,) conv weights, SMEM (scalar prefetch)
    s_ref: (1,) folded BN scale, SMEM
    b_ref: (1,) folded BN shift, SMEM
    x_ref: (block_b, C, H*W) input block, VMEM
    o_ref: (block_b, C, H*W) output block, VMEM
    """
    block_b, C, HW = x_ref.shape

    # Hoist all SMEM scalar reads out of the unrolled loops.
    w = [w_ref[i] for i in range(2 * NTAPS)]
    bn_scale = s_ref[0]
    bn_shift = b_ref[0]

    # Zero-padding edge masks, built once per grid step from a lane iota
    # (no row/col VMEM inputs, no per-tap AND+select).
    idx = jax.lax.broadcasted_iota(jnp.int32, (1, HW), 1)
    if W & (W - 1) == 0:                                  # power-of-two fast path
        row = idx >> (W.bit_length() - 1)
        col = idx & (W - 1)
    else:
        row = idx // W
        col = idx - row * W
    col_mf = [None] * KSIZE
    row_mf = [None] * KSIZE
    for k in range(KSIZE):
        d = k - PAD
        if d < 0:
            col_mf[k] = (col >= -d).astype(jnp.float32)
            row_mf[k] = (row >= -d).astype(jnp.float32)
        elif d > 0:
            col_mf[k] = (col < W - d).astype(jnp.float32)
            row_mf[k] = (row < H - d).astype(jnp.float32)

    cce = min(c_chunk, C)

    # Batch sub-chunks bound vreg pressure of the conv phase regardless of
    # block_b; C sub-chunks keep x from ever being live as a whole f32 copy.
    for b0 in range(0, block_b, batch_chunk):
        bc = min(batch_chunk, block_b - b0)

        # ---- channel mean / max (dim=1 of NCHW), streaming x in C-chunks ----
        sum_acc = None
        max_acc = None
        for c0 in range(0, C, c_chunk):
            cc = min(c_chunk, C - c0)
            xc = x_ref[b0:b0 + bc, c0:c0 + cc, :].astype(jnp.float32)
            csum = jnp.sum(xc, axis=1)                    # (bc, HW)
            cmax = jnp.max(xc, axis=1)                    # (bc, HW)
            sum_acc = csum if sum_acc is None else sum_acc + csum
            max_acc = cmax if max_acc is None else jnp.maximum(max_acc, cmax)
        avg = sum_acc * (1.0 / C)

        # ---- 7x7 conv (18 rolls) -> BN(eval) -> ReLU -> sigmoid (EUP) ----
        conv = _conv7x7_two_in(avg, max_acc, w, col_mf, row_mf, H, W)
        attn = jax.nn.sigmoid(jnp.maximum(conv * bn_scale + bn_shift, 0.0))

        # ---- gating epilogue: out = sigmoid(..) * x + x == x * (1 + attn).
        # Gate stays in the input/output dtype; the sublane broadcast is
        # hoisted out of the C loop (JAX does not CSE broadcast_in_dim).
        gate = (attn + 1.0).astype(o_ref.dtype)           # (bc, HW)
        gate_full = jnp.broadcast_to(gate[:, None, :], (bc, cce, HW))
        for c0 in range(0, C, c_chunk):
            cc = min(c_chunk, C - c0)
            g = gate_full if cc == cce else gate_full[:, :cc, :]
            xc = x_ref[b0:b0 + bc, c0:c0 + cc, :]
            o_ref[b0:b0 + bc, c0:c0 + cc, :] = (xc * g).astype(o_ref.dtype)


def _device_profile():
    """Generation-aware VMEM budgets / grid policy."""
    kind = ""
    try:
        kind = jax.devices()[0].device_kind.lower()
    except Exception:
        pass
    if "v7" in kind:
        # 64 MiB physical VMEM, ~32 MiB scoped, 2 TensorCores -> modest
        # blocks and an even number of grid steps when the batch allows it.
        return {"budget": 22 << 20, "vmem_limit": 32 << 20, "min_steps": 2}
    if "v6" in kind or "v5 lite" in kind or "v5e" in kind or "v5litepod" in kind:
        # 128 MiB VMEM, single TensorCore -> largest block that fits; extra
        # grid steps only cost per-step overhead and smaller DMAs.
        return {"budget": 48 << 20, "vmem_limit": 96 << 20, "min_steps": 1}
    # Unknown / older generations: stay conservative.
    return {"budget": 16 << 20, "vmem_limit": 32 << 20, "min_steps": 1}


def _pick_block_b(batch, channels, hw, itemsize, budget_bytes, min_steps):
    """Largest divisor of `batch` whose double-buffered in+out blocks fit the
    budget, with a sublane-utilisation floor (>= 8 f32 / 16 bf16 images when
    the batch allows) and, on 2-TC parts, a preference for an even grid."""
    per_image = channels * hw * itemsize * 2 * 2          # in + out, 2x buffered
    cap = max(1, int(budget_bytes) // per_image)
    cap = min(cap, batch)
    sublane_min = 8 if itemsize >= 4 else 16
    floor = min(batch, sublane_min, cap)

    divisors = [d for d in range(1, batch + 1) if batch % d == 0]
    candidates = [d for d in divisors if floor <= d <= cap]
    if not candidates:
        candidates = [max(d for d in divisors if d <= cap)]
    if min_steps >= 2:
        even = [d for d in candidates
                if (batch // d) >= min_steps and (batch // d) % 2 == 0]
        if even:
            return max(even)
    return max(candidates)


def _pick_batch_chunk(block_b, hw):
    """Conv-phase batch sub-chunk: keep the 14 column-shifted f32 variants of
    a (bc, HW) plane within ~40 of the 64 4-KiB vregs."""
    budget_bytes = 40 * 4096
    bc = max(1, budget_bytes // (14 * 4 * hw))
    return int(min(block_b, 8, bc))


def spatial_attention(x, conv_w, bn_scale, bn_shift, *, block_b=None):
    """x: (B, C, H, W); conv_w: (1, 2, 7, 7) OIHW; BN folded to scale/shift."""
    B, C, H, W = x.shape
    HW = H * W

    prof = _device_profile()

    x_flat = x.reshape(B, C, HW)                          # lane-dense layout
    w_flat = conv_w.reshape(-1).astype(jnp.float32)       # (2*49,)
    s = jnp.asarray([bn_scale], jnp.float32)
    b = jnp.asarray([bn_shift], jnp.float32)

    if block_b is None:
        block_b = _pick_block_b(B, C, HW, x.dtype.itemsize,
                                prof["budget"], prof["min_steps"])
    assert B % block_b == 0

    kernel = functools.partial(
        _spatial_attention_kernel, H=H, W=W,
        batch_chunk=_pick_batch_chunk(block_b, HW),
        c_chunk=min(C, 8))

    out_flat = pl.pallas_call(
        kernel,
        out_shape=jax.ShapeDtypeStruct((B, C, HW), x.dtype),
        grid_spec=pltpu.PrefetchScalarGridSpec(
            num_scalar_prefetch=3,                        # conv weights, BN scale/shift
            grid=(B // block_b,),
            in_specs=[
                pl.BlockSpec((block_b, C, HW), lambda bi, *_: (bi, 0, 0)),
            ],
            out_specs=pl.BlockSpec((block_b, C, HW), lambda bi, *_: (bi, 0, 0)),
        ),
        compiler_params=pltpu.CompilerParams(
            dimension_semantics=("parallel",),
            vmem_limit_bytes=prof["vmem_limit"],
        ),
    )(w_flat, s, b, x_flat)

    return out_flat.reshape(B, C, H, W)


def reference_forward(x, conv_w, bn_scale, bn_shift):
    """Pure-JAX reference matching the PyTorch forward (BN in eval mode)."""
    avg = jnp.mean(x, axis=1, keepdims=True)
    mx = jnp.max(x, axis=1, keepdims=True)
    inp = jnp.concatenate([avg, mx], axis=1)              # (B, 2, H, W)
    conv = jax.lax.conv_general_dilated(
        inp, conv_w, window_strides=(1, 1), padding=[(PAD, PAD), (PAD, PAD)],
        dimension_numbers=("NCHW", "OIHW", "NCHW"),
        precision=jax.lax.Precision.HIGHEST)
    bn = conv * bn_scale + bn_shift
    relu = jnp.maximum(bn, 0.0)
    return jax.nn.sigmoid(relu) * x + x


if __name__ == "__main__":
    B, C, H, W = 2, 4, 16, 16

    key = jax.random.PRNGKey(0)
    kx, kw = jax.random.split(key)
    x = jax.random.normal(kx, (B, C, H, W), dtype=jnp.float32)

    # Deterministic conv weight init (Conv2d(2, 1, 7, bias=False)), OIHW.
    conv_w = 0.1 * jax.random.normal(kw, (1, 2, KSIZE, KSIZE), dtype=jnp.float32)

    # Fresh BatchNorm2d(1) folded for eval:
    #   gamma=1, beta=0, running_mean=0, running_var=1, eps=1e-5
    eps = 1e-5
    bn_scale = 1.0 / jnp.sqrt(1.0 + eps)
    bn_shift = 0.0

    out = spatial_attention(x, conv_w, bn_scale, bn_shift)
    out = jax.block_until_ready(out)

    ref = reference_forward(x, conv_w, bn_scale, bn_shift)
    assert out.shape == (B, C, H, W)
    assert jnp.allclose(out, ref, atol=1e-5, rtol=1e-5), "mismatch vs JAX reference"

    print("KERNEL_OK")
</pallas_src>

<mosaic_0001>
module attributes {stable_mosaic.version = 11 : i64} {
  func.func @_spatial_attention_kernel(%arg0: i32, %arg1: memref<98xf32, #tpu.memory_space<smem>>, %arg2: memref<1xf32, #tpu.memory_space<smem>>, %arg3: memref<1xf32, #tpu.memory_space<smem>>, %arg4: memref<2x4x256xf32, #tpu.memory_space<vmem>>, %arg5: memref<2x4x256xf32, #tpu.memory_space<vmem>>) attributes {dimension_semantics = [#tpu.dimension_semantics<parallel>], iteration_bounds = array<i64: 1>, scalar_prefetch = 3 : i64, scratch_operands = 0 : i64, tpu.core_type = #tpu.core_type<tc>, window_params = [{transform_indices = @transform_0, window_bounds = array<i64: 2, 4, 256>}, {transform_indices = @transform_1, window_bounds = array<i64: 2, 4, 256>}]} {
    %c0 = arith.constant 0 : index
    %0 = memref.load %arg1[%c0] : memref<98xf32, #tpu.memory_space<smem>>
    %c1 = arith.constant 1 : index
    %1 = memref.load %arg1[%c1] : memref<98xf32, #tpu.memory_space<smem>>
    %c2 = arith.constant 2 : index
    %2 = memref.load %arg1[%c2] : memref<98xf32, #tpu.memory_space<smem>>
    %c3 = arith.constant 3 : index
    %3 = memref.load %arg1[%c3] : memref<98xf32, #tpu.memory_space<smem>>
    %c4 = arith.constant 4 : index
    %4 = memref.load %arg1[%c4] : memref<98xf32, #tpu.memory_space<smem>>
    %c5 = arith.constant 5 : index
    %5 = memref.load %arg1[%c5] : memref<98xf32, #tpu.memory_space<smem>>
    %c6 = arith.constant 6 : index
    %6 = memref.load %arg1[%c6] : memref<98xf32, #tpu.memory_space<smem>>
    %c7 = arith.constant 7 : index
    %7 = memref.load %arg1[%c7] : memref<98xf32, #tpu.memory_space<smem>>
    %c8 = arith.constant 8 : index
    %8 = memref.load %arg1[%c8] : memref<98xf32, #tpu.memory_space<smem>>
    %c9 = arith.constant 9 : index
    %9 = memref.load %arg1[%c9] : memref<98xf32, #tpu.memory_space<smem>>
    %c10 = arith.constant 10 : index
    %10 = memref.load %arg1[%c10] : memref<98xf32, #tpu.memory_space<smem>>
    %c11 = arith.constant 11 : index
    %11 = memref.load %arg1[%c11] : memref<98xf32, #tpu.memory_space<smem>>
    %c12 = arith.constant 12 : index
    %12 = memref.load %arg1[%c12] : memref<98xf32, #tpu.memory_space<smem>>
    %c13 = arith.constant 13 : index
    %13 = memref.load %arg1[%c13] : memref<98xf32, #tpu.memory_space<smem>>
    %c14 = arith.constant 14 : index
    %14 = memref.load %arg1[%c14] : memref<98xf32, #tpu.memory_space<smem>>
    %c15 = arith.constant 15 : index
    %15 = memref.load %arg1[%c15] : memref<98xf32, #tpu.memory_space<smem>>
    %c16 = arith.constant 16 : index
    %16 = memref.load %arg1[%c16] : memref<98xf32, #tpu.memory_space<smem>>
    %c17 = arith.constant 17 : index
    %17 = memref.load %arg1[%c17] : memref<98xf32, #tpu.memory_space<smem>>
    %c18 = arith.constant 18 : index
    %18 = memref.load %arg1[%c18] : memref<98xf32, #tpu.memory_space<smem>>
    %c19 = arith.constant 19 : index
    %19 = memref.load %arg1[%c19] : memref<98xf32, #tpu.memory_space<smem>>
    %c20 = arith.constant 20 : index
    %20 = memref.load %arg1[%c20] : memref<98xf32, #tpu.memory_space<smem>>
    %c21 = arith.constant 21 : index
    %21 = memref.load %arg1[%c21] : memref<98xf32, #tpu.memory_space<smem>>
    %c22 = arith.constant 22 : index
    %22 = memref.load %arg1[%c22] : memref<98xf32, #tpu.memory_space<smem>>
    %c23 = arith.constant 23 : index
    %23 = memref.load %arg1[%c23] : memref<98xf32, #tpu.memory_space<smem>>
    %c24 = arith.constant 24 : index
    %24 = memref.load %arg1[%c24] : memref<98xf32, #tpu.memory_space<smem>>
    %c25 = arith.constant 25 : index
    %25 = memref.load %arg1[%c25] : memref<98xf32, #tpu.memory_space<smem>>
    %c26 = arith.constant 26 : index
    %26 = memref.load %arg1[%c26] : memref<98xf32, #tpu.memory_space<smem>>
    %c27 = arith.constant 27 : index
    %27 = memref.load %arg1[%c27] : memref<98xf32, #tpu.memory_space<smem>>
    %c28 = arith.constant 28 : index
    %28 = memref.load %arg1[%c28] : memref<98xf32, #tpu.memory_space<smem>>
    %c29 = arith.constant 29 : index
    %29 = memref.load %arg1[%c29] : memref<98xf32, #tpu.memory_space<smem>>
    %c30 = arith.constant 30 : index
    %30 = memref.load %arg1[%c30] : memref<98xf32, #tpu.memory_space<smem>>
    %c31 = arith.constant 31 : index
    %31 = memref.load %arg1[%c31] : memref<98xf32, #tpu.memory_space<smem>>
    %c32 = arith.constant 32 : index
    %32 = memref.load %arg1[%c32] : memref<98xf32, #tpu.memory_space<smem>>
    %c33 = arith.constant 33 : index
    %33 = memref.load %arg1[%c33] : memref<98xf32, #tpu.memory_space<smem>>
    %c34 = arith.constant 34 : index
    %34 = memref.load %arg1[%c34] : memref<98xf32, #tpu.memory_space<smem>>
    %c35 = arith.constant 35 : index
    %35 = memref.load %arg1[%c35] : memref<98xf32, #tpu.memory_space<smem>>
    %c36 = arith.constant 36 : index
    %36 = memref.load %arg1[%c36] : memref<98xf32, #tpu.memory_space<smem>>
    %c37 = arith.constant 37 : index
    %37 = memref.load %arg1[%c37] : memref<98xf32, #tpu.memory_space<smem>>
    %c38 = arith.constant 38 : index
    %38 = memref.load %arg1[%c38] : memref<98xf32, #tpu.memory_space<smem>>
    %c39 = arith.constant 39 : index
    %39 = memref.load %arg1[%c39] : memref<98xf32, #tpu.memory_space<smem>>
    %c40 = arith.constant 40 : index
    %40 = memref.load %arg1[%c40] : memref<98xf32, #tpu.memory_space<smem>>
    %c41 = arith.constant 41 : index
    %41 = memref.load %arg1[%c41] : memref<98xf32, #tpu.memory_space<smem>>
    %c42 = arith.constant 42 : index
    %42 = memref.load %arg1[%c42] : memref<98xf32, #tpu.memory_space<smem>>
    %c43 = arith.constant 43 : index
    %43 = memref.load %arg1[%c43] : memref<98xf32, #tpu.memory_space<smem>>
    %c44 = arith.constant 44 : index
    %44 = memref.load %arg1[%c44] : memref<98xf32, #tpu.memory_space<smem>>
    %c45 = arith.constant 45 : index
    %45 = memref.load %arg1[%c45] : memref<98xf32, #tpu.memory_space<smem>>
    %c46 = arith.constant 46 : index
    %46 = memref.load %arg1[%c46] : memref<98xf32, #tpu.memory_space<smem>>
    %c47 = arith.constant 47 : index
    %47 = memref.load %arg1[%c47] : memref<98xf32, #tpu.memory_space<smem>>
    %c48 = arith.constant 48 : index
    %48 = memref.load %arg1[%c48] : memref<98xf32, #tpu.memory_space<smem>>
    %c49 = arith.constant 49 : index
    %49 = memref.load %arg1[%c49] : memref<98xf32, #tpu.memory_space<smem>>
    %c50 = arith.constant 50 : index
    %50 = memref.load %arg1[%c50] : memref<98xf32, #tpu.memory_space<smem>>
    %c51 = arith.constant 51 : index
    %51 = memref.load %arg1[%c51] : memref<98xf32, #tpu.memory_space<smem>>
    %c52 = arith.constant 52 : index
    %52 = memref.load %arg1[%c52] : memref<98xf32, #tpu.memory_space<smem>>
    %c53 = arith.constant 53 : index
    %53 = memref.load %arg1[%c53] : memref<98xf32, #tpu.memory_space<smem>>
    %c54 = arith.constant 54 : index
    %54 = memref.load %arg1[%c54] : memref<98xf32, #tpu.memory_space<smem>>
    %c55 = arith.constant 55 : index
    %55 = memref.load %arg1[%c55] : memref<98xf32, #tpu.memory_space<smem>>
    %c56 = arith.constant 56 : index
    %56 = memref.load %arg1[%c56] : memref<98xf32, #tpu.memory_space<smem>>
    %c57 = arith.constant 57 : index
    %57 = memref.load %arg1[%c57] : memref<98xf32, #tpu.memory_space<smem>>
    %c58 = arith.constant 58 : index
    %58 = memref.load %arg1[%c58] : memref<98xf32, #tpu.memory_space<smem>>
    %c59 = arith.constant 59 : index
    %59 = memref.load %arg1[%c59] : memref<98xf32, #tpu.memory_space<smem>>
    %c60 = arith.constant 60 : index
    %60 = memref.load %arg1[%c60] : memref<98xf32, #tpu.memory_space<smem>>
    %c61 = arith.constant 61 : index
    %61 = memref.load %arg1[%c61] : memref<98xf32, #tpu.memory_space<smem>>
    %c62 = arith.constant 62 : index
    %62 = memref.load %arg1[%c62] : memref<98xf32, #tpu.memory_space<smem>>
    %c63 = arith.constant 63 : index
    %63 = memref.load %arg1[%c63] : memref<98xf32, #tpu.memory_space<smem>>
    %c64 = arith.constant 64 : index
    %64 = memref.load %arg1[%c64] : memref<98xf32, #tpu.memory_space<smem>>
    %c65 = arith.constant 65 : index
    %65 = memref.load %arg1[%c65] : memref<98xf32, #tpu.memory_space<smem>>
    %c66 = arith.constant 66 : index
    %66 = memref.load %arg1[%c66] : memref<98xf32, #tpu.memory_space<smem>>
    %c67 = arith.constant 67 : index
    %67 = memref.load %arg1[%c67] : memref<98xf32, #tpu.memory_space<smem>>
    %c68 = arith.constant 68 : index
    %68 = memref.load %arg1[%c68] : memref<98xf32, #tpu.memory_space<smem>>
    %c69 = arith.constant 69 : index
    %69 = memref.load %arg1[%c69] : memref<98xf32, #tpu.memory_space<smem>>
    %c70 = arith.constant 70 : index
    %70 = memref.load %arg1[%c70] : memref<98xf32, #tpu.memory_space<smem>>
    %c71 = arith.constant 71 : index
    %71 = memref.load %arg1[%c71] : memref<98xf32, #tpu.memory_space<smem>>
    %c72 = arith.constant 72 : index
    %72 = memref.load %arg1[%c72] : memref<98xf32, #tpu.memory_space<smem>>
    %c73 = arith.constant 73 : index
    %73 = memref.load %arg1[%c73] : memref<98xf32, #tpu.memory_space<smem>>
    %c74 = arith.constant 74 : index
    %74 = memref.load %arg1[%c74] : memref<98xf32, #tpu.memory_space<smem>>
    %c75 = arith.constant 75 : index
    %75 = memref.load %arg1[%c75] : memref<98xf32, #tpu.memory_space<smem>>
    %c76 = arith.constant 76 : index
    %76 = memref.load %arg1[%c76] : memref<98xf32, #tpu.memory_space<smem>>
    %c77 = arith.constant 77 : index
    %77 = memref.load %arg1[%c77] : memref<98xf32, #tpu.memory_space<smem>>
    %c78 = arith.constant 78 : index
    %78 = memref.load %arg1[%c78] : memref<98xf32, #tpu.memory_space<smem>>
    %c79 = arith.constant 79 : index
    %79 = memref.load %arg1[%c79] : memref<98xf32, #tpu.memory_space<smem>>
    %c80 = arith.constant 80 : index
    %80 = memref.load %arg1[%c80] : memref<98xf32, #tpu.memory_space<smem>>
    %c81 = arith.constant 81 : index
    %81 = memref.load %arg1[%c81] : memref<98xf32, #tpu.memory_space<smem>>
    %c82 = arith.constant 82 : index
    %82 = memref.load %arg1[%c82] : memref<98xf32, #tpu.memory_space<smem>>
    %c83 = arith.constant 83 : index
    %83 = memref.load %arg1[%c83] : memref<98xf32, #tpu.memory_space<smem>>
    %c84 = arith.constant 84 : index
    %84 = memref.load %arg1[%c84] : memref<98xf32, #tpu.memory_space<smem>>
    %c85 = arith.constant 85 : index
    %85 = memref.load %arg1[%c85] : memref<98xf32, #tpu.memory_space<smem>>
    %c86 = arith.constant 86 : index
    %86 = memref.load %arg1[%c86] : memref<98xf32, #tpu.memory_space<smem>>
    %c87 = arith.constant 87 : index
    %87 = memref.load %arg1[%c87] : memref<98xf32, #tpu.memory_space<smem>>
    %c88 = arith.constant 88 : index
    %88 = memref.load %arg1[%c88] : memref<98xf32, #tpu.memory_space<smem>>
    %c89 = arith.constant 89 : index
    %89 = memref.load %arg1[%c89] : memref<98xf32, #tpu.memory_space<smem>>
    %c90 = arith.constant 90 : index
    %90 = memref.load %arg1[%c90] : memref<98xf32, #tpu.memory_space<smem>>
    %c91 = arith.constant 91 : index
    %91 = memref.load %arg1[%c91] : memref<98xf32, #tpu.memory_space<smem>>
    %c92 = arith.constant 92 : index
    %92 = memref.load %arg1[%c92] : memref<98xf32, #tpu.memory_space<smem>>
    %c93 = arith.constant 93 : index
    %93 = memref.load %arg1[%c93] : memref<98xf32, #tpu.memory_space<smem>>
    %c94 = arith.constant 94 : index
    %94 = memref.load %arg1[%c94] : memref<98xf32, #tpu.memory_space<smem>>
    %c95 = arith.constant 95 : index
    %95 = memref.load %arg1[%c95] : memref<98xf32, #tpu.memory_space<smem>>
    %c96 = arith.constant 96 : index
    %96 = memref.load %arg1[%c96] : memref<98xf32, #tpu.memory_space<smem>>
    %c97 = arith.constant 97 : index
    %97 = memref.load %arg1[%c97] : memref<98xf32, #tpu.memory_space<smem>>
    %c0_0 = arith.constant 0 : index
    %98 = memref.load %arg2[%c0_0] : memref<1xf32, #tpu.memory_space<smem>>
    %c0_1 = arith.constant 0 : index
    %99 = memref.load %arg3[%c0_1] : memref<1xf32, #tpu.memory_space<smem>>
    %100 = tpu.iota {dimensions = array<i32: 1>} : vector<1x256xi32>
    %c4_i32 = arith.constant 4 : i32
    %101 = vector.broadcast %c4_i32 : i32 to vector<1x256xi32>
    %102 = arith.shrsi %100, %101 : vector<1x256xi32>
    %c15_i32 = arith.constant 15 : i32
    %103 = vector.broadcast %c15_i32 : i32 to vector<1x256xi32>
    %104 = arith.andi %100, %103 : vector<1x256xi32>
    %c3_i32 = arith.constant 3 : i32
    %105 = vector.broadcast %c3_i32 : i32 to vector<1x256xi32>
    %106 = arith.cmpi sge, %104, %105 : vector<1x256xi32>
    %107 = arith.extui %106 : vector<1x256xi1> to vector<1x256xi32>
    %108 = arith.sitofp %107 : vector<1x256xi32> to vector<1x256xf32>
    %c3_i32_2 = arith.constant 3 : i32
    %109 = vector.broadcast %c3_i32_2 : i32 to vector<1x256xi32>
    %110 = arith.cmpi sge, %102, %109 : vector<1x256xi32>
    %111 = arith.extui %110 : vector<1x256xi1> to vector<1x256xi32>
    %112 = arith.sitofp %111 : vector<1x256xi32> to vector<1x256xf32>
    %c2_i32 = arith.constant 2 : i32
    %113 = vector.broadcast %c2_i32 : i32 to vector<1x256xi32>
    %114 = arith.cmpi sge, %104, %113 : vector<1x256xi32>
    %115 = arith.extui %114 : vector<1x256xi1> to vector<1x256xi32>
    %116 = arith.sitofp %115 : vector<1x256xi32> to vector<1x256xf32>
    %c2_i32_3 = arith.constant 2 : i32
    %117 = vector.broadcast %c2_i32_3 : i32 to vector<1x256xi32>
    %118 = arith.cmpi sge, %102, %117 : vector<1x256xi32>
    %119 = arith.extui %118 : vector<1x256xi1> to vector<1x256xi32>
    %120 = arith.sitofp %119 : vector<1x256xi32> to vector<1x256xf32>
    %c1_i32 = arith.constant 1 : i32
    %121 = vector.broadcast %c1_i32 : i32 to vector<1x256xi32>
    %122 = arith.cmpi sge, %104, %121 : vector<1x256xi32>
    %123 = arith.extui %122 : vector<1x256xi1> to vector<1x256xi32>
    %124 = arith.sitofp %123 : vector<1x256xi32> to vector<1x256xf32>
    %c1_i32_4 = arith.constant 1 : i32
    %125 = vector.broadcast %c1_i32_4 : i32 to vector<1x256xi32>
    %126 = arith.cmpi sge, %102, %125 : vector<1x256xi32>
    %127 = arith.extui %126 : vector<1x256xi1> to vector<1x256xi32>
    %128 = arith.sitofp %127 : vector<1x256xi32> to vector<1x256xf32>
    %c15_i32_5 = arith.constant 15 : i32
    %129 = vector.broadcast %c15_i32_5 : i32 to vector<1x256xi32>
    %130 = arith.cmpi slt, %104, %129 : vector<1x256xi32>
    %131 = arith.extui %130 : vector<1x256xi1> to vector<1x256xi32>
    %132 = arith.sitofp %131 : vector<1x256xi32> to vector<1x256xf32>
    %c15_i32_6 = arith.constant 15 : i32
    %133 = vector.broadcast %c15_i32_6 : i32 to vector<1x256xi32>
    %134 = arith.cmpi slt, %102, %133 : vector<1x256xi32>
    %135 = arith.extui %134 : vector<1x256xi1> to vector<1x256xi32>
    %136 = arith.sitofp %135 : vector<1x256xi32> to vector<1x256xf32>
    %c14_i32 = arith.constant 14 : i32
    %137 = vector.broadcast %c14_i32 : i32 to vector<1x256xi32>
    %138 = arith.cmpi slt, %104, %137 : vector<1x256xi32>
    %139 = arith.extui %138 : vector<1x256xi1> to vector<1x256xi32>
    %140 = arith.sitofp %139 : vector<1x256xi32> to vector<1x256xf32>
    %c14_i32_7 = arith.constant 14 : i32
    %141 = vector.broadcast %c14_i32_7 : i32 to vector<1x256xi32>
    %142 = arith.cmpi slt, %102, %141 : vector<1x256xi32>
    %143 = arith.extui %142 : vector<1x256xi1> to vector<1x256xi32>
    %144 = arith.sitofp %143 : vector<1x256xi32> to vector<1x256xf32>
    %c13_i32 = arith.constant 13 : i32
    %145 = vector.broadcast %c13_i32 : i32 to vector<1x256xi32>
    %146 = arith.cmpi slt, %104, %145 : vector<1x256xi32>
    %147 = arith.extui %146 : vector<1x256xi1> to vector<1x256xi32>
    %148 = arith.sitofp %147 : vector<1x256xi32> to vector<1x256xf32>
    %c13_i32_8 = arith.constant 13 : i32
    %149 = vector.broadcast %c13_i32_8 : i32 to vector<1x256xi32>
    %150 = arith.cmpi slt, %102, %149 : vector<1x256xi32>
    %151 = arith.extui %150 : vector<1x256xi1> to vector<1x256xi32>
    %152 = arith.sitofp %151 : vector<1x256xi32> to vector<1x256xf32>
    %c0_9 = arith.constant 0 : index
    %c0_10 = arith.constant 0 : index
    %c0_11 = arith.constant 0 : index
    %153 = vector.load %arg4[%c0_9, %c0_10, %c0_11] : memref<2x4x256xf32, #tpu.memory_space<vmem>>, vector<2x4x256xf32>
    %cst = arith.constant dense<0.000000e+00> : vector<2x256xf32>
    %154 = vector.multi_reduction <add>, %153, %cst [1] : vector<2x4x256xf32> to vector<2x256xf32>
    %cst_12 = arith.constant dense<0xFF800000> : vector<2x256xf32>
    %155 = vector.multi_reduction <maximumf>, %153, %cst_12 [1] : vector<2x4x256xf32> to vector<2x256xf32>
    %cst_13 = arith.constant 2.500000e-01 : f32
    %156 = vector.broadcast %cst_13 : f32 to vector<2x256xf32>
    %157 = arith.mulf %154, %156 : vector<2x256xf32>
    %c3_i32_14 = arith.constant 3 : i32
    %158 = tpu.dynamic_rotate %157 by %c3_i32_14 dim 1 : vector<2x256xf32>, i32 -> vector<2x256xf32>
    %159 = vector.broadcast %108 : vector<1x256xf32> to vector<2x256xf32>
    %160 = arith.mulf %158, %159 : vector<2x256xf32>
    %c3_i32_15 = arith.constant 3 : i32
    %161 = tpu.dynamic_rotate %155 by %c3_i32_15 dim 1 : vector<2x256xf32>, i32 -> vector<2x256xf32>
    %162 = vector.broadcast %108 : vector<1x256xf32> to vector<2x256xf32>
    %163 = arith.mulf %161, %162 : vector<2x256xf32>
    %c2_i32_16 = arith.constant 2 : i32
    %164 = tpu.dynamic_rotate %157 by %c2_i32_16 dim 1 : vector<2x256xf32>, i32 -> vector<2x256xf32>
    %165 = vector.broadcast %116 : vector<1x256xf32> to vector<2x256xf32>
    %166 = arith.mulf %164, %165 : vector<2x256xf32>
    %c2_i32_17 = arith.constant 2 : i32
    %167 = tpu.dynamic_rotate %155 by %c2_i32_17 dim 1 : vector<2x256xf32>, i32 -> vector<2x256xf32>
    %168 = vector.broadcast %116 : vector<1x256xf32> to vector<2x256xf32>
    %169 = arith.mulf %167, %168 : vector<2x256xf32>
    %c1_i32_18 = arith.constant 1 : i32
    %170 = tpu.dynamic_rotate %157 by %c1_i32_18 dim 1 : vector<2x256xf32>, i32 -> vector<2x256xf32>
    %171 = vector.broadcast %124 : vector<1x256xf32> to vector<2x256xf32>
    %172 = arith.mulf %170, %171 : vector<2x256xf32>
    %c1_i32_19 = arith.constant 1 : i32
    %173 = tpu.dynamic_rotate %155 by %c1_i32_19 dim 1 : vector<2x256xf32>, i32 -> vector<2x256xf32>
    %174 = vector.broadcast %124 : vector<1x256xf32> to vector<2x256xf32>
    %175 = arith.mulf %173, %174 : vector<2x256xf32>
    %c255_i32 = arith.constant 255 : i32
    %176 = tpu.dynamic_rotate %157 by %c255_i32 dim 1 : vector<2x256xf32>, i32 -> vector<2x256xf32>
    %177 = vector.broadcast %132 : vector<1x256xf32> to vector<2x256xf32>
    %178 = arith.mulf %176, %177 : vector<2x256xf32>
    %c255_i32_20 = arith.constant 255 : i32
    %179 = tpu.dynamic_rotate %155 by %c255_i32_20 dim 1 : vector<2x256xf32>, i32 -> vector<2x256xf32>
    %180 = vector.broadcast %132 : vector<1x256xf32> to vector<2x256xf32>
    %181 = arith.mulf %179, %180 : vector<2x256xf32>
    %c254_i32 = arith.constant 254 : i32
    %182 = tpu.dynamic_rotate %157 by %c254_i32 dim 1 : vector<2x256xf32>, i32 -> vector<2x256xf32>
    %183 = vector.broadcast %140 : vector<1x256xf32> to vector<2x256xf32>
    %184 = arith.mulf %182, %183 : vector<2x256xf32>
    %c254_i32_21 = arith.constant 254 : i32
    %185 = tpu.dynamic_rotate %155 by %c254_i32_21 dim 1 : vector<2x256xf32>, i32 -> vector<2x256xf32>
    %186 = vector.broadcast %140 : vector<1x256xf32> to vector<2x256xf32>
    %187 = arith.mulf %185, %186 : vector<2x256xf32>
    %c253_i32 = arith.constant 253 : i32
    %188 = tpu.dynamic_rotate %157 by %c253_i32 dim 1 : vector<2x256xf32>, i32 -> vector<2x256xf32>
    %189 = vector.broadcast %148 : vector<1x256xf32> to vector<2x256xf32>
    %190 = arith.mulf %188, %189 : vector<2x256xf32>
    %c253_i32_22 = arith.constant 253 : i32
    %191 = tpu.dynamic_rotate %155 by %c253_i32_22 dim 1 : vector<2x256xf32>, i32 -> vector<2x256xf32>
    %192 = vector.broadcast %148 : vector<1x256xf32> to vector<2x256xf32>
    %193 = arith.mulf %191, %192 : vector<2x256xf32>
    %194 = vector.broadcast %0 : f32 to vector<2x256xf32>
    %195 = arith.mulf %194, %160 : vector<2x256xf32>
    %196 = vector.broadcast %49 : f32 to vector<2x256xf32>
    %197 = arith.mulf %196, %163 : vector<2x256xf32>
    %198 = arith.addf %195, %197 : vector<2x256xf32>
    %199 = vector.broadcast %1 : f32 to vector<2x256xf32>
    %200 = arith.mulf %199, %166 : vector<2x256xf32>
    %201 = vector.broadcast %50 : f32 to vector<2x256xf32>
    %202 = arith.mulf %201, %169 : vector<2x256xf32>
    %203 = arith.addf %200, %202 : vector<2x256xf32>
    %204 = arith.addf %198, %203 : vector<2x256xf32>
    %205 = vector.broadcast %2 : f32 to vector<2x256xf32>
    %206 = arith.mulf %205, %172 : vector<2x256xf32>
    %207 = vector.broadcast %51 : f32 to vector<2x256xf32>
    %208 = arith.mulf %207, %175 : vector<2x256xf32>
    %209 = arith.addf %206, %208 : vector<2x256xf32>
    %210 = arith.addf %204, %209 : vector<2x256xf32>
    %211 = vector.broadcast %3 : f32 to vector<2x256xf32>
    %212 = arith.mulf %211, %157 : vector<2x256xf32>
    %213 = vector.broadcast %52 : f32 to vector<2x256xf32>
    %214 = arith.mulf %213, %155 : vector<2x256xf32>
    %215 = arith.addf %212, %214 : vector<2x256xf32>
    %216 = arith.addf %210, %215 : vector<2x256xf32>
    %217 = vector.broadcast %4 : f32 to vector<2x256xf32>
    %218 = arith.mulf %217, %178 : vector<2x256xf32>
    %219 = vector.broadcast %53 : f32 to vector<2x256xf32>
    %220 = arith.mulf %219, %181 : vector<2x256xf32>
    %221 = arith.addf %218, %220 : vector<2x256xf32>
    %222 = arith.addf %216, %221 : vector<2x256xf32>
    %223 = vector.broadcast %5 : f32 to vector<2x256xf32>
    %224 = arith.mulf %223, %184 : vector<2x256xf32>
    %225 = vector.broadcast %54 : f32 to vector<2x256xf32>
    %226 = arith.mulf %225, %187 : vector<2x256xf32>
    %227 = arith.addf %224, %226 : vector<2x256xf32>
    %228 = arith.addf %222, %227 : vector<2x256xf32>
    %229 = vector.broadcast %6 : f32 to vector<2x256xf32>
    %230 = arith.mulf %229, %190 : vector<2x256xf32>
    %231 = vector.broadcast %55 : f32 to vector<2x256xf32>
    %232 = arith.mulf %231, %193 : vector<2x256xf32>
    %233 = arith.addf %230, %232 : vector<2x256xf32>
    %234 = arith.addf %228, %233 : vector<2x256xf32>
    %c48_i32 = arith.constant 48 : i32
    %235 = tpu.dynamic_rotate %234 by %c48_i32 dim 1 : vector<2x256xf32>, i32 -> vector<2x256xf32>
    %236 = vector.broadcast %112 : vector<1x256xf32> to vector<2x256xf32>
    %237 = arith.mulf %235, %236 : vector<2x256xf32>
    %238 = vector.broadcast %7 : f32 to vector<2x256xf32>
    %239 = arith.mulf %238, %160 : vector<2x256xf32>
    %240 = vector.broadcast %56 : f32 to vector<2x256xf32>
    %241 = arith.mulf %240, %163 : vector<2x256xf32>
    %242 = arith.addf %239, %241 : vector<2x256xf32>
    %243 = vector.broadcast %8 : f32 to vector<2x256xf32>
    %244 = arith.mulf %243, %166 : vector<2x256xf32>
    %245 = vector.broadcast %57 : f32 to vector<2x256xf32>
    %246 = arith.mulf %245, %169 : vector<2x256xf32>
    %247 = arith.addf %244, %246 : vector<2x256xf32>
    %248 = arith.addf %242, %247 : vector<2x256xf32>
    %249 = vector.broadcast %9 : f32 to vector<2x256xf32>
    %250 = arith.mulf %249, %172 : vector<2x256xf32>
    %251 = vector.broadcast %58 : f32 to vector<2x256xf32>
    %252 = arith.mulf %251, %175 : vector<2x256xf32>
    %253 = arith.addf %250, %252 : vector<2x256xf32>
    %254 = arith.addf %248, %253 : vector<2x256xf32>
    %255 = vector.broadcast %10 : f32 to vector<2x256xf32>
    %256 = arith.mulf %255, %157 : vector<2x256xf32>
    %257 = vector.broadcast %59 : f32 to vector<2x256xf32>
    %258 = arith.mulf %257, %155 : vector<2x256xf32>
    %259 = arith.addf %256, %258 : vector<2x256xf32>
    %260 = arith.addf %254, %259 : vector<2x256xf32>
    %261 = vector.broadcast %11 : f32 to vector<2x256xf32>
    %262 = arith.mulf %261, %178 : vector<2x256xf32>
    %263 = vector.broadcast %60 : f32 to vector<2x256xf32>
    %264 = arith.mulf %263, %181 : vector<2x256xf32>
    %265 = arith.addf %262, %264 : vector<2x256xf32>
    %266 = arith.addf %260, %265 : vector<2x256xf32>
    %267 = vector.broadcast %12 : f32 to vector<2x256xf32>
    %268 = arith.mulf %267, %184 : vector<2x256xf32>
    %269 = vector.broadcast %61 : f32 to vector<2x256xf32>
    %270 = arith.mulf %269, %187 : vector<2x256xf32>
    %271 = arith.addf %268, %270 : vector<2x256xf32>
    %272 = arith.addf %266, %271 : vector<2x256xf32>
    %273 = vector.broadcast %13 : f32 to vector<2x256xf32>
    %274 = arith.mulf %273, %190 : vector<2x256xf32>
    %275 = vector.broadcast %62 : f32 to vector<2x256xf32>
    %276 = arith.mulf %275, %193 : vector<2x256xf32>
    %277 = arith.addf %274, %276 : vector<2x256xf32>
    %278 = arith.addf %272, %277 : vector<2x256xf32>
    %c32_i32 = arith.constant 32 : i32
    %279 = tpu.dynamic_rotate %278 by %c32_i32 dim 1 : vector<2x256xf32>, i32 -> vector<2x256xf32>
    %280 = vector.broadcast %120 : vector<1x256xf32> to vector<2x256xf32>
    %281 = arith.mulf %279, %280 : vector<2x256xf32>
    %282 = arith.addf %237, %281 : vector<2x256xf32>
    %283 = vector.broadcast %14 : f32 to vector<2x256xf32>
    %284 = arith.mulf %283, %160 : vector<2x256xf32>
    %285 = vector.broadcast %63 : f32 to vector<2x256xf32>
    %286 = arith.mulf %285, %163 : vector<2x256xf32>
    %287 = arith.addf %284, %286 : vector<2x256xf32>
    %288 = vector.broadcast %15 : f32 to vector<2x256xf32>
    %289 = arith.mulf %288, %166 : vector<2x256xf32>
    %290 = vector.broadcast %64 : f32 to vector<2x256xf32>
    %291 = arith.mulf %290, %169 : vector<2x256xf32>
    %292 = arith.addf %289, %291 : vector<2x256xf32>
    %293 = arith.addf %287, %292 : vector<2x256xf32>
    %294 = vector.broadcast %16 : f32 to vector<2x256xf32>
    %295 = arith.mulf %294, %172 : vector<2x256xf32>
    %296 = vector.broadcast %65 : f32 to vector<2x256xf32>
    %297 = arith.mulf %296, %175 : vector<2x256xf32>
    %298 = arith.addf %295, %297 : vector<2x256xf32>
    %299 = arith.addf %293, %298 : vector<2x256xf32>
    %300 = vector.broadcast %17 : f32 to vector<2x256xf32>
    %301 = arith.mulf %300, %157 : vector<2x256xf32>
    %302 = vector.broadcast %66 : f32 to vector<2x256xf32>
    %303 = arith.mulf %302, %155 : vector<2x256xf32>
    %304 = arith.addf %301, %303 : vector<2x256xf32>
    %305 = arith.addf %299, %304 : vector<2x256xf32>
    %306 = vector.broadcast %18 : f32 to vector<2x256xf32>
    %307 = arith.mulf %306, %178 : vector<2x256xf32>
    %308 = vector.broadcast %67 : f32 to vector<2x256xf32>
    %309 = arith.mulf %308, %181 : vector<2x256xf32>
    %310 = arith.addf %307, %309 : vector<2x256xf32>
    %311 = arith.addf %305, %310 : vector<2x256xf32>
    %312 = vector.broadcast %19 : f32 to vector<2x256xf32>
    %313 = arith.mulf %312, %184 : vector<2x256xf32>
    %314 = vector.broadcast %68 : f32 to vector<2x256xf32>
    %315 = arith.mulf %314, %187 : vector<2x256xf32>
    %316 = arith.addf %313, %315 : vector<2x256xf32>
    %317 = arith.addf %311, %316 : vector<2x256xf32>
    %318 = vector.broadcast %20 : f32 to vector<2x256xf32>
    %319 = arith.mulf %318, %190 : vector<2x256xf32>
    %320 = vector.broadcast %69 : f32 to vector<2x256xf32>
    %321 = arith.mulf %320, %193 : vector<2x256xf32>
    %322 = arith.addf %319, %321 : vector<2x256xf32>
    %323 = arith.addf %317, %322 : vector<2x256xf32>
    %c16_i32 = arith.constant 16 : i32
    %324 = tpu.dynamic_rotate %323 by %c16_i32 dim 1 : vector<2x256xf32>, i32 -> vector<2x256xf32>
    %325 = vector.broadcast %128 : vector<1x256xf32> to vector<2x256xf32>
    %326 = arith.mulf %324, %325 : vector<2x256xf32>
    %327 = arith.addf %282, %326 : vector<2x256xf32>
    %328 = vector.broadcast %21 : f32 to vector<2x256xf32>
    %329 = arith.mulf %328, %160 : vector<2x256xf32>
    %330 = vector.broadcast %70 : f32 to vector<2x256xf32>
    %331 = arith.mulf %330, %163 : vector<2x256xf32>
    %332 = arith.addf %329, %331 : vector<2x256xf32>
    %333 = vector.broadcast %22 : f32 to vector<2x256xf32>
    %334 = arith.mulf %333, %166 : vector<2x256xf32>
    %335 = vector.broadcast %71 : f32 to vector<2x256xf32>
    %336 = arith.mulf %335, %169 : vector<2x256xf32>
    %337 = arith.addf %334, %336 : vector<2x256xf32>
    %338 = arith.addf %332, %337 : vector<2x256xf32>
    %339 = vector.broadcast %23 : f32 to vector<2x256xf32>
    %340 = arith.mulf %339, %172 : vector<2x256xf32>
    %341 = vector.broadcast %72 : f32 to vector<2x256xf32>
    %342 = arith.mulf %341, %175 : vector<2x256xf32>
    %343 = arith.addf %340, %342 : vector<2x256xf32>
    %344 = arith.addf %338, %343 : vector<2x256xf32>
    %345 = vector.broadcast %24 : f32 to vector<2x256xf32>
    %346 = arith.mulf %345, %157 : vector<2x256xf32>
    %347 = vector.broadcast %73 : f32 to vector<2x256xf32>
    %348 = arith.mulf %347, %155 : vector<2x256xf32>
    %349 = arith.addf %346, %348 : vector<2x256xf32>
    %350 = arith.addf %344, %349 : vector<2x256xf32>
    %351 = vector.broadcast %25 : f32 to vector<2x256xf32>
    %352 = arith.mulf %351, %178 : vector<2x256xf32>
    %353 = vector.broadcast %74 : f32 to vector<2x256xf32>
    %354 = arith.mulf %353, %181 : vector<2x256xf32>
    %355 = arith.addf %352, %354 : vector<2x256xf32>
    %356 = arith.addf %350, %355 : vector<2x256xf32>
    %357 = vector.broadcast %26 : f32 to vector<2x256xf32>
    %358 = arith.mulf %357, %184 : vector<2x256xf32>
    %359 = vector.broadcast %75 : f32 to vector<2x256xf32>
    %360 = arith.mulf %359, %187 : vector<2x256xf32>
    %361 = arith.addf %358, %360 : vector<2x256xf32>
    %362 = arith.addf %356, %361 : vector<2x256xf32>
    %363 = vector.broadcast %27 : f32 to vector<2x256xf32>
    %364 = arith.mulf %363, %190 : vector<2x256xf32>
    %365 = vector.broadcast %76 : f32 to vector<2x256xf32>
    %366 = arith.mulf %365, %193 : vector<2x256xf32>
    %367 = arith.addf %364, %366 : vector<2x256xf32>
    %368 = arith.addf %362, %367 : vector<2x256xf32>
    %369 = arith.addf %327, %368 : vector<2x256xf32>
    %370 = vector.broadcast %28 : f32 to vector<2x256xf32>
    %371 = arith.mulf %370, %160 : vector<2x256xf32>
    %372 = vector.broadcast %77 : f32 to vector<2x256xf32>
    %373 = arith.mulf %372, %163 : vector<2x256xf32>
    %374 = arith.addf %371, %373 : vector<2x256xf32>
    %375 = vector.broadcast %29 : f32 to vector<2x256xf32>
    %376 = arith.mulf %375, %166 : vector<2x256xf32>
    %377 = vector.broadcast %78 : f32 to vector<2x256xf32>
    %378 = arith.mulf %377, %169 : vector<2x256xf32>
    %379 = arith.addf %376, %378 : vector<2x256xf32>
    %380 = arith.addf %374, %379 : vector<2x256xf32>
    %381 = vector.broadcast %30 : f32 to vector<2x256xf32>
    %382 = arith.mulf %381, %172 : vector<2x256xf32>
    %383 = vector.broadcast %79 : f32 to vector<2x256xf32>
    %384 = arith.mulf %383, %175 : vector<2x256xf32>
    %385 = arith.addf %382, %384 : vector<2x256xf32>
    %386 = arith.addf %380, %385 : vector<2x256xf32>
    %387 = vector.broadcast %31 : f32 to vector<2x256xf32>
    %388 = arith.mulf %387, %157 : vector<2x256xf32>
    %389 = vector.broadcast %80 : f32 to vector<2x256xf32>
    %390 = arith.mulf %389, %155 : vector<2x256xf32>
    %391 = arith.addf %388, %390 : vector<2x256xf32>
    %392 = arith.addf %386, %391 : vector<2x256xf32>
    %393 = vector.broadcast %32 : f32 to vector<2x256xf32>
    %394 = arith.mulf %393, %178 : vector<2x256xf32>
    %395 = vector.broadcast %81 : f32 to vector<2x256xf32>
    %396 = arith.mulf %395, %181 : vector<2x256xf32>
    %397 = arith.addf %394, %396 : vector<2x256xf32>
    %398 = arith.addf %392, %397 : vector<2x256xf32>
    %399 = vector.broadcast %33 : f32 to vector<2x256xf32>
    %400 = arith.mulf %399, %184 : vector<2x256xf32>
    %401 = vector.broadcast %82 : f32 to vector<2x256xf32>
    %402 = arith.mulf %401, %187 : vector<2x256xf32>
    %403 = arith.addf %400, %402 : vector<2x256xf32>
    %404 = arith.addf %398, %403 : vector<2x256xf32>
    %405 = vector.broadcast %34 : f32 to vector<2x256xf32>
    %406 = arith.mulf %405, %190 : vector<2x256xf32>
    %407 = vector.broadcast %83 : f32 to vector<2x256xf32>
    %408 = arith.mulf %407, %193 : vector<2x256xf32>
    %409 = arith.addf %406, %408 : vector<2x256xf32>
    %410 = arith.addf %404, %409 : vector<2x256xf32>
    %c240_i32 = arith.constant 240 : i32
    %411 = tpu.dynamic_rotate %410 by %c240_i32 dim 1 : vector<2x256xf32>, i32 -> vector<2x256xf32>
    %412 = vector.broadcast %136 : vector<1x256xf32> to vector<2x256xf32>
    %413 = arith.mulf %411, %412 : vector<2x256xf32>
    %414 = arith.addf %369, %413 : vector<2x256xf32>
    %415 = vector.broadcast %35 : f32 to vector<2x256xf32>
    %416 = arith.mulf %415, %160 : vector<2x256xf32>
    %417 = vector.broadcast %84 : f32 to vector<2x256xf32>
    %418 = arith.mulf %417, %163 : vector<2x256xf32>
    %419 = arith.addf %416, %418 : vector<2x256xf32>
    %420 = vector.broadcast %36 : f32 to vector<2x256xf32>
    %421 = arith.mulf %420, %166 : vector<2x256xf32>
    %422 = vector.broadcast %85 : f32 to vector<2x256xf32>
    %423 = arith.mulf %422, %169 : vector<2x256xf32>
    %424 = arith.addf %421, %423 : vector<2x256xf32>
    %425 = arith.addf %419, %424 : vector<2x256xf32>
    %426 = vector.broadcast %37 : f32 to vector<2x256xf32>
    %427 = arith.mulf %426, %172 : vector<2x256xf32>
    %428 = vector.broadcast %86 : f32 to vector<2x256xf32>
    %429 = arith.mulf %428, %175 : vector<2x256xf32>
    %430 = arith.addf %427, %429 : vector<2x256xf32>
    %431 = arith.addf %425, %430 : vector<2x256xf32>
    %432 = vector.broadcast %38 : f32 to vector<2x256xf32>
    %433 = arith.mulf %432, %157 : vector<2x256xf32>
    %434 = vector.broadcast %87 : f32 to vector<2x256xf32>
    %435 = arith.mulf %434, %155 : vector<2x256xf32>
    %436 = arith.addf %433, %435 : vector<2x256xf32>
    %437 = arith.addf %431, %436 : vector<2x256xf32>
    %438 = vector.broadcast %39 : f32 to vector<2x256xf32>
    %439 = arith.mulf %438, %178 : vector<2x256xf32>
    %440 = vector.broadcast %88 : f32 to vector<2x256xf32>
    %441 = arith.mulf %440, %181 : vector<2x256xf32>
    %442 = arith.addf %439, %441 : vector<2x256xf32>
    %443 = arith.addf %437, %442 : vector<2x256xf32>
    %444 = vector.broadcast %40 : f32 to vector<2x256xf32>
    %445 = arith.mulf %444, %184 : vector<2x256xf32>
    %446 = vector.broadcast %89 : f32 to vector<2x256xf32>
    %447 = arith.mulf %446, %187 : vector<2x256xf32>
    %448 = arith.addf %445, %447 : vector<2x256xf32>
    %449 = arith.addf %443, %448 : vector<2x256xf32>
    %450 = vector.broadcast %41 : f32 to vector<2x256xf32>
    %451 = arith.mulf %450, %190 : vector<2x256xf32>
    %452 = vector.broadcast %90 : f32 to vector<2x256xf32>
    %453 = arith.mulf %452, %193 : vector<2x256xf32>
    %454 = arith.addf %451, %453 : vector<2x256xf32>
    %455 = arith.addf %449, %454 : vector<2x256xf32>
    %c224_i32 = arith.constant 224 : i32
    %456 = tpu.dynamic_rotate %455 by %c224_i32 dim 1 : vector<2x256xf32>, i32 -> vector<2x256xf32>
    %457 = vector.broadcast %144 : vector<1x256xf32> to vector<2x256xf32>
    %458 = arith.mulf %456, %457 : vector<2x256xf32>
    %459 = arith.addf %414, %458 : vector<2x256xf32>
    %460 = vector.broadcast %42 : f32 to vector<2x256xf32>
    %461 = arith.mulf %460, %160 : vector<2x256xf32>
    %462 = vector.broadcast %91 : f32 to vector<2x256xf32>
    %463 = arith.mulf %462, %163 : vector<2x256xf32>
    %464 = arith.addf %461, %463 : vector<2x256xf32>
    %465 = vector.broadcast %43 : f32 to vector<2x256xf32>
    %466 = arith.mulf %465, %166 : vector<2x256xf32>
    %467 = vector.broadcast %92 : f32 to vector<2x256xf32>
    %468 = arith.mulf %467, %169 : vector<2x256xf32>
    %469 = arith.addf %466, %468 : vector<2x256xf32>
    %470 = arith.addf %464, %469 : vector<2x256xf32>
    %471 = vector.broadcast %44 : f32 to vector<2x256xf32>
    %472 = arith.mulf %471, %172 : vector<2x256xf32>
    %473 = vector.broadcast %93 : f32 to vector<2x256xf32>
    %474 = arith.mulf %473, %175 : vector<2x256xf32>
    %475 = arith.addf %472, %474 : vector<2x256xf32>
    %476 = arith.addf %470, %475 : vector<2x256xf32>
    %477 = vector.broadcast %45 : f32 to vector<2x256xf32>
    %478 = arith.mulf %477, %157 : vector<2x256xf32>
    %479 = vector.broadcast %94 : f32 to vector<2x256xf32>
    %480 = arith.mulf %479, %155 : vector<2x256xf32>
    %481 = arith.addf %478, %480 : vector<2x256xf32>
    %482 = arith.addf %476, %481 : vector<2x256xf32>
    %483 = vector.broadcast %46 : f32 to vector<2x256xf32>
    %484 = arith.mulf %483, %178 : vector<2x256xf32>
    %485 = vector.broadcast %95 : f32 to vector<2x256xf32>
    %486 = arith.mulf %485, %181 : vector<2x256xf32>
    %487 = arith.addf %484, %486 : vector<2x256xf32>
    %488 = arith.addf %482, %487 : vector<2x256xf32>
    %489 = vector.broadcast %47 : f32 to vector<2x256xf32>
    %490 = arith.mulf %489, %184 : vector<2x256xf32>
    %491 = vector.broadcast %96 : f32 to vector<2x256xf32>
    %492 = arith.mulf %491, %187 : vector<2x256xf32>
    %493 = arith.addf %490, %492 : vector<2x256xf32>
    %494 = arith.addf %488, %493 : vector<2x256xf32>
    %495 = vector.broadcast %48 : f32 to vector<2x256xf32>
    %496 = arith.mulf %495, %190 : vector<2x256xf32>
    %497 = vector.broadcast %97 : f32 to vector<2x256xf32>
    %498 = arith.mulf %497, %193 : vector<2x256xf32>
    %499 = arith.addf %496, %498 : vector<2x256xf32>
    %500 = arith.addf %494, %499 : vector<2x256xf32>
    %c208_i32 = arith.constant 208 : i32
    %501 = tpu.dynamic_rotate %500 by %c208_i32 dim 1 : vector<2x256xf32>, i32 -> vector<2x256xf32>
    %502 = vector.broadcast %152 : vector<1x256xf32> to vector<2x256xf32>
    %503 = arith.mulf %501, %502 : vector<2x256xf32>
    %504 = arith.addf %459, %503 : vector<2x256xf32>
    %505 = vector.broadcast %98 : f32 to vector<2x256xf32>
    %506 = arith.mulf %504, %505 : vector<2x256xf32>
    %507 = vector.broadcast %99 : f32 to vector<2x256xf32>
    %508 = arith.addf %506, %507 : vector<2x256xf32>
    %cst_23 = arith.constant 0.000000e+00 : f32
    %509 = vector.broadcast %cst_23 : f32 to vector<2x256xf32>
    %510 = arith.maximumf %508, %509 : vector<2x256xf32>
    %511 = arith.negf %510 : vector<2x256xf32>
    %512 = math.exp %511 : vector<2x256xf32>
    %cst_24 = arith.constant 1.000000e+00 : f32
    %513 = vector.broadcast %cst_24 : f32 to vector<2x256xf32>
    %514 = arith.addf %513, %512 : vector<2x256xf32>
    %515 = arith.divf %513, %514 : vector<2x256xf32>
    %cst_25 = arith.constant 1.000000e+00 : f32
    %516 = vector.broadcast %cst_25 : f32 to vector<2x256xf32>
    %517 = arith.addf %515, %516 : vector<2x256xf32>
    %518 = vector.shape_cast %517 : vector<2x256xf32> to vector<2x1x256xf32>
    %519 = vector.shape_cast %518 : vector<2x1x256xf32> to vector<2x1x256xf32>
    %520 = vector.broadcast %519 : vector<2x1x256xf32> to vector<2x4x256xf32>
    %c0_26 = arith.constant 0 : index
    %c0_27 = arith.constant 0 : index
    %c0_28 = arith.constant 0 : index
    %521 = vector.load %arg4[%c0_26, %c0_27, %c0_28] : memref<2x4x256xf32, #tpu.memory_space<vmem>>, vector<2x4x256xf32>
    %522 = arith.mulf %521, %520 : vector<2x4x256xf32>
    %c0_29 = arith.constant 0 : index
    %c0_30 = arith.constant 0 : index
    %c0_31 = arith.constant 0 : index
    %523 = vector.load %arg5[%c0_29, %c0_30, %c0_31] : memref<2x4x256xf32, #tpu.memory_space<vmem>>, vector<2x4x256xf32>
    tpu.vector_store %arg5[%c0_29, %c0_30, %c0_31], %522 {strides = array<i32>} : memref<2x4x256xf32, #tpu.memory_space<vmem>>, vector<2x4x256xf32>,
    return
  }
  func.func @transform_0(%arg0: i32, %arg1: memref<98xf32, #tpu.memory_space<smem>>, %arg2: memref<1xf32, #tpu.memory_space<smem>>, %arg3: memref<1xf32, #tpu.memory_space<smem>>) -> (i32, i32, i32) {
    %c0_i32 = arith.constant 0 : i32
    %c0_i32_0 = arith.constant 0 : i32
    %c0_i32_1 = arith.constant 0 : i32
    return %arg0, %c0_i32, %c0_i32_0 : i32, i32, i32
  }
  func.func @transform_1(%arg0: i32, %arg1: memref<98xf32, #tpu.memory_space<smem>>, %arg2: memref<1xf32, #tpu.memory_space<smem>>, %arg3: memref<1xf32, #tpu.memory_space<smem>>) -> (i32, i32, i32) {
    %c0_i32 = arith.constant 0 : i32
    %c0_i32_0 = arith.constant 0 : i32
    %c0_i32_1 = arith.constant 0 : i32
    return %arg0, %c0_i32, %c0_i32_0 : i32, i32, i32
  }
}

</mosaic_0001>

<bundles_post_ra>
// kernel: tpu_custom_call.1
= control target key start
LH: loop header
LB: loop body
LE: loop exit
PB: predicated region body
PF: predicated region fallthrough
CT: control target
= control target key end

     0   :  { %s2646_s0 = inlined_call_operand.vmem [shape: f32[98], index: 0, kind: input, shape index: {}]   ;;  %s2647_s1 = inlined_call_operand.<no memory space> [shape: f32[1], index: 1, kind: input, shape index: {}]   ;;  %s2648_s2 = inlined_call_operand.<no memory space> [shape: f32[1], index: 2, kind: input, shape index: {}]   ;;  %s2649_s3 = inlined_call_operand.hbm [shape: f32[2,4,256], index: 3, kind: input, shape index: {}]   ;;  %s2650_s4 = inlined_call_operand.hbm [shape: f32[2,4,256], index: 4, kind: output, shape index: {}]  }
   0x1   :  { %2748 = sst [smem:[#allocation97_spill]] %s2647_s1  ;;  %s9_s17 = sshll.u32 %s2646_s0, 4  ;;  %s10_s17 = int_to_ptr.vmem [resolvable:$true] %s9_s17 }
   0x2   :  { %2749 = sst [smem:[#allocation98_spill]] %s2648_s2  ;;  %s1283_s18 = scalar_lea.vmem %s10_s17, 16 }
   0x3   :  { %2750 = sst [smem:[#allocation99_spill]] %s2650_s4  ;;  %p1284_p0 = scmp.ne.s32.totalorder %s10_s17, %s1283_s18 }
   0x4   :  { %p1288_p1 = scmp.lt.s32.totalorder %s10_s17, %s10_s17  ;;  %p1289_p2 = scmp.lt.s32.totalorder %s1283_s18, %s1283_s18 }
   0x6   :  { %p1290_p3 = por %p1289_p2, %p1288_p1 }
   0x8   :  { %p1291_p4 = pnand %p1290_p3, %p1284_p0 }
   0xa   :  { %1294 = shalt.err (!%p1291_p4)  }
   0xb   :  { %s1341_s19 = smov [#allocation3]  }
   0xc   :  { %12 = dma.vmem_to_smem %s10_s17, 16, %s1341_s19, [#allocation2] }
   0xd   :  { %1335 = dma.done.wait [#allocation2], 16 }
   0xe   :  { %1336 = vsyncadd [#allocation2], 4294967280 }
   0xf   :  { %16 = sfence }
  0x10   :  { %17 = vsyncpa [#allocation7], 0 }
  0x11   :  { %18 = vsyncpa [#allocation8], 0  ;;  %s1342_s20 = smov [#allocation6]  }
  0x12   :  { %s24_s21 = sshll.u32 %s1342_s20, 4  ;;  %s25_s21 = int_to_ptr.vmem [resolvable:$true] %s24_s21 }
  0x13   :  { %s1303_s22 = scalar_lea.vmem %s25_s21, 256  ;;  %p1308_p6 = scmp.lt.s32.totalorder %s25_s21, %s25_s21 }
  0x14   :  { %p1304_p5 = scmp.ne.s32.totalorder %s25_s21, %s1303_s22  ;;  %p1309_p7 = scmp.lt.s32.totalorder %s1303_s22, %s1303_s22 }
  0x16   :  { %p1310_p8 = por %p1309_p7, %p1308_p6 }
  0x18   :  { %p1311_p9 = pnand %p1310_p8, %p1304_p5 }
  0x1a   :  { %1314 = shalt.err (!%p1311_p9)
}
  0x1b   :  { %s2651_s0 = smov 128   ;;  %s2652_s23 = smov 8  }
  0x1c   :  { %30 = dma.hbm_to_vmem [thread:$0]  %s2649_s3, 256, %s25_s21, [#allocation7], %s2651_s0, %s2651_s0, %s2652_s23  }
  0x1d   :  { %1337 = dma.done.wait [#allocation7], 256  }
  0x1e   :  { %1338 = vsyncadd [#allocation7], 4294967040  ;;  %vm221_vm0 = vcmask 1043456   ;;  %v213_v0 = vld [vmem:[#allocation6] sm:$0xff]  ;;  %v214_v1 = vld [vmem:[#allocation6 + $0x8] sm:$0xff]  ;;  %vm286_vm1 = vcmask 1041409  }
  0x1f   :  { %v250_v2 = vsel %vm221_vm0, %v213_v0, -inf  ;;  %v264_v3 = vsel %vm221_vm0, %v214_v1, -inf  ;;  %v217_v4 = vcombine.high %v213_v0, %v213_v0  ;;  %v218_v5 = vcombine.high %v214_v1, %v214_v1  ;;  %s1345_s3 = smov 2   ;;  %s1346_s26 = smov 3  }
  0x20   :  { %v251_v6 = vrot.slane %v250_v2, 4  ;;  %v265_v7 = vrot.slane %v264_v3, 4  ;;  %v222_v8 = vsel %vm221_vm0, %v213_v0, 0.0  ;;  %v236_v9 = vsel %vm221_vm0, %v214_v1, 0.0  ;;  %s1347_s27 = smov 1   ;;  %s1348_s28 = smov 127  }
  0x21   :  { %v257_v10 = vsel %vm221_vm0, %v217_v4, -inf  ;;  %v271_v11 = vsel %vm221_vm0, %v218_v5, -inf  ;;  %v223_v12 = vrot.slane %v222_v8, 4  ;;  %v237_v13 = vrot.slane %v236_v9, 4  ;;  %s1430_s29 = sld [smem:[#allocation3 + $0x31]]  ;;  %s1349_s8 = smov 126  }
  0x22   :  { %v252_v14 = vmax.f32 %v250_v2, %v251_v6  ;;  %v266_v15 = vmax.f32 %v264_v3, %v265_v7  ;;  %v258_v16 = vrot.slane %v257_v10, 4  ;;  %v272_v17 = vrot.slane %v271_v11, 4  ;;  %s1432_s30 = sld [smem:[#allocation3 + $0x38]]  ;;  %s1350_s17 = smov 125  }
  0x23   :  { %v224_v18 = vadd.f32 %v223_v12, %v222_v8  ;;  %v238_v19 = vadd.f32 %v237_v13, %v236_v9  ;;  %v229_v20 = vsel %vm221_vm0, %v217_v4, 0.0  ;;  %v243_v21 = vsel %vm221_vm0, %v218_v5, 0.0  ;;  %s1434_s5 = sld [smem:[#allocation3 + $0x32]] }
  0x24   :  { %v253_v22 = vrot.slane %v252_v14, 2  ;;  %v267_v23 = vrot.slane %v266_v15, 2  ;;  %v259_v24 = vmax.f32 %v257_v10, %v258_v16  ;;  %v273_v25 = vmax.f32 %v271_v11, %v272_v17  ;;  %s1436_s6 = sld [smem:[#allocation3 + $0x39]] }
  0x25   :  { %v225_v26 = vrot.slane %v224_v18, 2  ;;  %v239_v27 = vrot.slane %v238_v19, 2  ;;  %v230_v28 = vrot.slane %v229_v20, 4  ;;  %v244_v29 = vrot.slane %v243_v21, 4  ;;  %s1438_s7 = sld [smem:[#allocation3 + $0x33]] }
  0x26   :  { %v254_v30 = vmax.f32 %v252_v14, %v253_v22  ;;  %v268_v31 = vmax.f32 %v266_v15, %v267_v23  ;;  %v260_v32 = vrot.slane %v259_v24, 2  ;;  %v274_v33 = vrot.slane %v273_v25, 2  ;;  %s1440_s9 = sld [smem:[#allocation3 + $0x3a]] }
  0x27   :  { %v226_v34 = vadd.f32 %v225_v26, %v224_v18  ;;  %v240_v35 = vadd.f32 %v239_v27, %v238_v19  ;;  %v231_v36 = vadd.f32 %v230_v28, %v229_v20  ;;  %v245_v37 = vadd.f32 %v244_v29, %v243_v21  ;;  %2752 = sst [smem:[#allocation14_spill]] %s1430_s29 }
  0x28   :  { %v255_v38 = vrot.slane %v254_v30, 1  ;;  %v269_v39 = vrot.slane %v268_v31, 1  ;;  %v261_v40 = vmax.f32 %v259_v24, %v260_v32  ;;  %v275_v41 = vmax.f32 %v273_v25, %v274_v33  ;;  %2753 = sst [smem:[#allocation15_spill]] %s1432_s30 }
  0x29   :  { %v227_v42 = vrot.slane %v226_v34, 1  ;;  %v241_v43 = vrot.slane %v240_v35, 1  ;;  %v232_v44 = vrot.slane %v231_v36, 2  ;;  %v246_v45 = vrot.slane %v245_v37, 2  ;;  %2754 = sst [smem:[#allocation16_spill]] %s1434_s5 }
  0x2a   :  { %v1402_v46 = vmax.f32 %v254_v30, %v255_v38  ;;  %v1404_v47 = vmax.f32 %v268_v31, %v269_v39  ;;  %v262_v48 = vrot.slane %v261_v40, 1  ;;  %v276_v49 = vrot.slane %v275_v41, 1  ;;  %2755 = sst [smem:[#allocation17_spill]] %s1436_s6 }
  0x2b   :  { %v228_v50 = vadd.f32 %v227_v42, %v226_v34  ;;  %v242_v51 = vadd.f32 %v241_v43, %v240_v35  ;;  %v233_v52 = vadd.f32 %v232_v44, %v231_v36  ;;  %v247_v53 = vadd.f32 %v246_v45, %v245_v37  ;;  %2756 = sst [smem:[#allocation18_spill]] %s1438_s7 }
  0x2c   :  { %v304_v54 = vsel %vm286_vm1, %v1404_v47, %v1402_v46  ;;  %v1409_v55 = vmax.f32 %v261_v40, %v262_v48  ;;  %v1411_v56 = vmax.f32 %v275_v41, %v276_v49  ;;  %2757 = sst [smem:[#allocation19_spill]] %s1440_s9  ;;  %v2707_v4 = vlaneseq }
  0x2d   :  { %325 = vrot.lane.b32.xlu0 %v304_v54, %s1345_s3  ;;  %308 = vrot.lane.b32.xlu1 %v304_v54, %s1346_s26  ;;  %v1413_v57 = vmul.f32 0.25, %v228_v50  ;;  %v1418_v59 = vmul.f32 0.25, %v242_v51  ;;  %v234_v60 = vrot.slane %v233_v52, 1  ;;  %v248_v61 = vrot.slane %v247_v53, 1  ;;  %s1442_s10 = sld [smem:[#allocation3 + $0x3f]] }
  0x2e   :  { %2751 = vst [vmem:[#allocation13_spill] sm:$0xff] %v1411_v56  ;;  %v305_v58 = vsel %vm286_vm1, %v1411_v56, %v1409_v55  ;;  %s1444_s11 = sld [smem:[#allocation3 + $0x1]]  ;;  %v1493_v5 = vand.u32 127, %v2707_v4  ;;  %v2710_v9 = vmov 0.0   ;;  %v404_v16 = vstv %s1430_s29 }
  0x2f   :  { %v287_v62 = vsel %vm286_vm1, %v1418_v59, %v1413_v57  ;;  %v235_v63 = vadd.f32 %v234_v60, %v233_v52  ;;  %v249_v0 = vadd.f32 %v248_v61, %v247_v53  ;;  %s1446_s12 = sld [smem:[#allocation3 + $0x8]]  ;;  %v412_v21 = vstv %s1434_s5 }
  0x30   :  { %s1448_s13 = sld [smem:[#allocation3 + $0x40]]  ;;  %v1504_v6 = vadd.s32 128, %v1493_v5  ;;  %v1515_v7 = vand.u32 15, %v1493_v5  ;;  %v495_v25 = vstv %s1432_s30  ;;  %v503_v31 = vstv %s1436_s6 }
  0x31   :  { %342 = vrot.lane.b32.xlu0 %v304_v54, %s1347_s27  ;;  %310 = vrot.lane.b32.xlu1 %v305_v58, %s1346_s26  ;;  %v1423_v1 = vmul.f32 0.25, %v235_v63  ;;  %v1425_v2 = vmul.f32 0.25, %v249_v0  ;;  %s1450_s14 = sld [smem:[#allocation3 + $0x2]]  ;;  %vm295_vm14 = vcmp.lt.s32.totalorder %v1493_v5, 3  ;;  %vm320_vm15 = vcmp.lt.s32.totalorder %v1493_v5, 2 }
  0x32   :  { %s1452_s15 = sld [smem:[#allocation3 + $0x9]]  ;;  %2782 = vst [vmem:[#allocation44_spill] sm:$0xff] %v1504_v6  ;;  %v1518_v8 = vand.u32 15, %v1504_v6  ;;  %vm141_vm2 = vcmp.ge.s32.totalorder %v1515_v7, 3  ;;  %vm153_vm4 = vcmp.ge.s32.totalorder %v1515_v7, 2  ;;  %vm165_vm6 = vcmp.ge.s32.totalorder %v1515_v7, 1 }
  0x33   :  { %v288_v3 = vsel %vm286_vm1, %v1425_v2, %v1423_v1  ;;  %2758 = sst [smem:[#allocation20_spill]] %s1442_s10  ;;  %v1541_v10 = vsel %vm141_vm2, 1.0, %v2710_v9  ;;  %vm177_vm8 = vcmp.lt.s32.totalorder %v1515_v7, 15  ;;  %v1550_v12 = vsel %vm153_vm4, 1.0, %v2710_v9 }
  0x34   :  { %2759 = sst [smem:[#allocation21_spill]] %s1444_s11  ;;  %vm142_vm3 = vcmp.ge.s32.totalorder %v1518_v8, 3  ;;  %vm154_vm5 = vcmp.ge.s32.totalorder %v1518_v8, 2  ;;  %vm166_vm7 = vcmp.ge.s32.totalorder %v1518_v8, 1  ;;  %v1556_v14 = vsel %vm165_vm6, 1.0, %v2710_v9 }
  0x35   :  { %291 = vrot.lane.b32.xlu0 %v287_v62, %s1346_s26  ;;  %327 = vrot.lane.b32.xlu1 %v305_v58, %s1345_s3  ;;  %2760 = sst [smem:[#allocation22_spill]] %s1446_s12  ;;  %v1544_v11 = vsel %vm142_vm3, 1.0, %v2710_v9  ;;  %v1553_v13 = vsel %vm154_vm5, 1.0, %v2710_v9  ;;  %vm178_vm9 = vcmp.lt.s32.totalorder %v1518_v8, 15  ;;  %v1562_v15 = vsel %vm166_vm7, 1.0, %v2710_v9 }
  0x36   :  { %2761 = sst [smem:[#allocation23_spill]] %s1448_s13  ;;  %v1570_v19 = vsel %vm177_vm8, 1.0, %v2710_v9  ;;  %v1578_v23 = vsel %vm178_vm9, 1.0, %v2710_v9  ;;  %v588_v34 = vstv %s1442_s10  ;;  %vm189_vm10 = vcmp.lt.s32.totalorder %v1515_v7, 14 }
  0x37   :  { %2762 = sst [smem:[#allocation24_spill]] %s1450_s14  ;;  %vm190_vm11 = vcmp.lt.s32.totalorder %v1518_v8, 14  ;;  %v1614_v45 = vsel %vm189_vm10, 1.0, %v2710_v9  ;;  %vm201_vm12 = vcmp.lt.s32.totalorder %v1515_v7, 13  ;;  %vm202_vm13 = vcmp.lt.s32.totalorder %v1518_v8, 13 }
  0x38   :  { %2763 = sst [smem:[#allocation25_spill]] %s1452_s15  ;;  %v1617_v48 = vsel %vm190_vm11, 1.0, %v2710_v9  ;;  %vm337_vm0 = vcmp.lt.s32.totalorder %v1493_v5, 1  ;;  %vm354_vm2 = vcmp.lt.s32.totalorder %v1493_v5, 127  ;;  %vm371_vm3 = vcmp.lt.s32.totalorder %v1493_v5, 126 }
  0x39   :  { %316 = vrot.lane.b32.xlu0 %v287_v62, %s1345_s3  ;;  %344 = vrot.lane.b32.xlu1 %v305_v58, %s1347_s27  ;;  %s1454_s16 = sld [smem:[#allocation3 + $0x41]]  ;;  %vm388_vm4 = vcmp.lt.s32.totalorder %v1493_v5, 125  ;;  %vm578_vm6 = vcmp.lt.s32.totalorder %v1493_v5, 32  ;;  %vm487_vm11 = vcmp.lt.s32.totalorder %v1493_v5, 48 }
  0x3a   :  { %s1456_s18 = sld [smem:[#allocation3]] }
  0x3b   :  { %s1458_s19 = sld [smem:[#allocation3 + $0x4]] }
  0x3c   :  { %s1460_s20 = sld [smem:[#allocation3 + $0x7]] }
  0x3d   :  { %333 = vrot.lane.b32.xlu0 %v287_v62, %s1347_s27  ;;  %318 = vrot.lane.b32.xlu1 %v288_v3, %s1345_s3  ;;  %s1462_s21 = sld [smem:[#allocation3 + $0x3]] }
  0x3e   :  { %s1464_s22 = sld [smem:[#allocation3 + $0x34]] }
  0x3f   :  { %2764 = sst [smem:[#allocation26_spill]] %s1454_s16 }
  0x40   :  { %2765 = sst [smem:[#allocation27_spill]] %s1456_s18 }
  0x41   :  { %350 = vrot.lane.b32.xlu0 %v287_v62, %s1348_s28  ;;  %335 = vrot.lane.b32.xlu1 %v288_v3, %s1347_s27  ;;  %2766 = sst [smem:[#allocation28_spill]] %s1458_s19 }
  0x42   :  { %2767 = sst [smem:[#allocation29_spill]] %s1460_s20 }
  0x43   :  { %s1466_s24 = sld [smem:[#allocation3 + $0x35]]  ;;  %v429_v17 = vstv %s1462_s21 }
  0x44   :  { %s1468_s25 = sld [smem:[#allocation3 + $0xa]]  ;;  %v434_v18 = vstv %s1464_s22  ;;  %v431_v27 = vmul.f32 %v429_v17, %v1423_v1  ;;  %v433_v28 = vmul.f32 %v429_v17, %v1425_v2  ;;  %v430_v35 = vmul.f32 %v429_v17, %v1413_v57 }
  0x45   :  { %352 = vrot.lane.b32.xlu1 %v288_v3, %s1348_s28  ;;  %293 = vrot.lane.b32.xlu0 %v288_v3, %s1346_s26  ;;  %s1470_s3 = sld [smem:[#allocation3 + $0xb]]  ;;  %v436_v29 = vmul.f32 %v434_v18, %v1409_v55  ;;  %v438_v30 = vmul.f32 %v434_v18, %v1411_v56  ;;  %v432_v36 = vmul.f32 %v429_v17, %v1418_v59 }
  0x46   :  { %s1472_s26 = sld [smem:[#allocation3 + $0x5]]  ;;  %v435_v37 = vmul.f32 %v434_v18, %v1402_v46  ;;  %v437_v38 = vmul.f32 %v434_v18, %v1404_v47 }
  0x47   :  { %s1474_s27 = sld [smem:[#allocation3 + $0xc]]  ;;  %v440_v42 = vadd.f32 %v436_v29, %v431_v27  ;;  %v442_v43 = vadd.f32 %v438_v30, %v433_v28 }
  0x48   :  { %s1480_s0 = sld [smem:[#allocation3 + $0x36]]  ;;  %v439_v61 = vadd.f32 %v435_v37, %v430_v35 }
  0x49   :  { %361 = vrot.lane.b32.xlu1 %v305_v58, %s1348_s28  ;;  %359 = vrot.lane.b32.xlu0 %v304_v54, %s1348_s28  ;;  %2768 = sst [smem:[#allocation30_spill]] %s1466_s24  ;;  %v1634_v63 = vsel %vm286_vm1, %v442_v43, %v440_v42 }
  0x4a   :  { %s1476_s28 = sld [smem:[#allocation3 + $0x3b]]  ;;  %v520_v39 = vstv %s1468_s25 }
  0x4b   :  { %2769 = sst [smem:[#allocation31_spill]] %s1470_s3  ;;  %v522_v51 = vmul.f32 %v520_v39, %v1423_v1  ;;  %v524_v52 = vmul.f32 %v520_v39, %v1425_v2  ;;  %v521_v18 = vmul.f32 %v520_v39, %v1413_v57  ;;  %v523_v27 = vmul.f32 %v520_v39, %v1418_v59 }
  0x4c   :  { %2770 = sst [smem:[#allocation32_spill]] %s1472_s26 }
  0x4d   :  { %369 = vrot.lane.b32.xlu1 %v288_v3, %s1349_s8  ;;  %367 = vrot.lane.b32.xlu0 %v287_v62, %s1349_s8  ;;  %2771 = sst [smem:[#allocation33_spill]] %s1474_s27 }
  0x4e   :  { %2773 = sst [smem:[#allocation35_spill]] %s1480_s0 }
  0x4f   :  { %s1482_s23 = sld [smem:[#allocation3 + $0x3d]] }
  0x50   :  { %s1486_s4 = sld [smem:[#allocation3 + $0xf]]  ;;  %v525_v40 = vstv %s1476_s28 }
  0x51   :  { %378 = vrot.lane.b32.xlu1 %v305_v58, %s1349_s8  ;;  %376 = vrot.lane.b32.xlu0 %v304_v54, %s1349_s8  ;;  %s1478_s8 = sld [smem:[#allocation3 + $0x3c]]  ;;  %v527_v53 = vmul.f32 %v525_v40, %v1409_v55  ;;  %v526_v28 = vmul.f32 %v525_v40, %v1402_v46  ;;  %v528_v29 = vmul.f32 %v525_v40, %v1404_v47 }
  0x52   :  { %s1488_s2 = sld [smem:[#allocation3 + $0x6]] }
  0x53   :  { %s1490_s1 = sld [smem:[#allocation3 + $0xd]]  ;;  %v531_v30 = vadd.f32 %v527_v53, %v522_v51  ;;  %v1666_v51 = vsel %vm201_vm12, 1.0, %v2710_v9  ;;  %v530_v53 = vadd.f32 %v526_v28, %v521_v18  ;;  %vm671_vm12 = vcmp.lt.s32.totalorder %v1493_v5, 16 }
  0x54   :  { %s1495_s16 = sld [smem:[#allocation3 + $0x10]] }
  0x55   :  { %386 = vrot.lane.b32.xlu1 %v288_v3, %s1350_s17  ;;  %384 = vrot.lane.b32.xlu0 %v287_v62, %s1350_s17  ;;  %2774 = sst [smem:[#allocation36_spill]] %s1482_s23  ;;  %v441_v62 = vadd.f32 %v437_v38, %v432_v36 }
  0x56   :  { %2776 = sst [smem:[#allocation38_spill]] %s1486_s4 }
  0x57   :  { %2772 = sst [smem:[#allocation34_spill]] %s1478_s8  ;;  %v1658_v7 = vsel %vm286_vm1, %v441_v62, %v439_v61  ;;  %v1674_v61 = vsel %vm202_vm13, 1.0, %v2710_v9 }
  0x58   :  { %2777 = sst [smem:[#allocation39_spill]] %s1488_s2 }
  0x59   :  { %395 = vrot.lane.b32.xlu1 %v305_v58, %s1350_s17  ;;  %393 = vrot.lane.b32.xlu0 %v304_v54, %s1350_s17  ;;  %s1484_s17 = sld [smem:[#allocation3 + $0xe]]  ;;  %v529_v54 = vmul.f32 %v525_v40, %v1411_v56 }
  0x5a   :  { %2778 = sst [smem:[#allocation40_spill]] %s1490_s1 }
  0x5b   :  { %2779 = sst [smem:[#allocation41_spill]] %s1495_s16  ;;  %v533_v35 = vadd.f32 %v529_v54, %v524_v52  ;;  %v532_v54 = vadd.f32 %v528_v29, %v523_v27 }
  0x5c   :  { %s1497_s27 = sld [smem:[#allocation3 + $0x11]] }
  0x5d   :  { %s1499_s8 = sld [smem:[#allocation3 + $0x37]]  ;;  %v1677_v62 = vsel %vm286_vm1, %v533_v35, %v531_v30 }
  0x5e   :  { %s1501_s0 = sld [smem:[#allocation3 + $0x3e]] }
  0x5f   :  { %2775 = sst [smem:[#allocation37_spill]] %s1484_s17 }
  0x60   :  { %s1506_s17 = sld [smem:[#allocation3 + $0x12]] }
  0x61   :  { %s1508_s4 = sld [smem:[#allocation3 + $0x13]] }
  0x62   :  { %s1510_s2 = sld [smem:[#allocation3 + $0x42]]  ;;  %v613_v3 = vstv %s1497_s27 }
  0x63   :  { %2780 = sst [smem:[#allocation42_spill]] %s1499_s8  ;;  %v615_v36 = vmul.f32 %v613_v3, %v1423_v1  ;;  %v617_v37 = vmul.f32 %v613_v3, %v1425_v2  ;;  %v614_v29 = vmul.f32 %v613_v3, %v1413_v57  ;;  %v616_v30 = vmul.f32 %v613_v3, %v1418_v59 }
  0x64   :  { %2781 = sst [smem:[#allocation43_spill]] %s1501_s0 }
  0x65   :  { %s1512_s1 = sld [smem:[#allocation3 + $0x43]] }
  0x66   :  { %2783 = sst [smem:[#allocation45_spill]] %s1506_s17 }
  0x67   :  { %2784 = sst [smem:[#allocation46_spill]] %s1508_s4 }
  0x68   :  { %s1520_s16 = sld [smem:[#allocation3 + $0x14]]  ;;  %v618_v17 = vstv %s1510_s2 }
  0x69   :  { %s1522_s0 = sld [smem:[#allocation3 + $0x44]]  ;;  %v620_v38 = vmul.f32 %v618_v17, %v1409_v55  ;;  %v622_v39 = vmul.f32 %v618_v17, %v1411_v56  ;;  %v619_v35 = vmul.f32 %v618_v17, %v1402_v46  ;;  %v621_v9 = vmul.f32 %v618_v17, %v1404_v47 }
  0x6a   :  { %s1524_s8 = sld [smem:[#allocation3 + $0x1d]] }
  0x6b   :  { %s1526_s23 = sld [smem:[#allocation3 + $0x1e]]  ;;  %v624_v28 = vadd.f32 %v620_v38, %v615_v36  ;;  %v626_v8 = vadd.f32 %v622_v39, %v617_v37  ;;  %v1696_v37 = vsel %vm286_vm1, %v532_v54, %v530_v53  ;;  %v623_v38 = vadd.f32 %v619_v35, %v614_v29 }
  0x6c   :  { %s1530_s4 = sld [smem:[#allocation3 + $0x45]]  ;;  %v625_v39 = vadd.f32 %v621_v9, %v616_v30 }
  0x6d   :  { %s1583_s21 = sld [smem:[#allocation3 + $0x50]]  ;;  %v1714_v53 = vsel %vm286_vm1, %v626_v8, %v624_v28 }
  0x6e   :  { %2785 = sst [smem:[#allocation47_spill]] %s1520_s16  ;;  %v1738_v54 = vsel %vm286_vm1, %v625_v39, %v623_v38 }
  0x6f   :  { %2786 = sst [smem:[#allocation48_spill]] %s1522_s0 }
  0x70   :  { %2787 = sst [smem:[#allocation49_spill]] %s1524_s8 }
  0x71   :  { %2788 = sst [smem:[#allocation50_spill]] %s1526_s23 }
  0x72   :  { %2789 = sst [smem:[#allocation51_spill]] %s1530_s4 }
  0x73   :  { %s1535_s16 = sld [smem:[#allocation3 + $0x1c]]  ;;  %v795_v36 = vstv %s1583_s21 }
  0x74   :  { %s1538_s23 = sld [smem:[#allocation3 + $0x20]]  ;;  %v797_v9 = vmul.f32 %v795_v36, %v1409_v55  ;;  %v799_v8 = vmul.f32 %v795_v36, %v1411_v56  ;;  %v796_v35 = vmul.f32 %v795_v36, %v1402_v46  ;;  %v798_v4 = vmul.f32 %v795_v36, %v1404_v47 }
  0x75   :  { %s1547_s4 = sld [smem:[#allocation3 + $0x1f]] }
  0x76   :  { %s1589_s22 = sld [smem:[#allocation3 + $0x21]] }
  0x77   :  { %s1595_s14 = sld [smem:[#allocation3 + $0x51]] }
  0x78   :  { %s1601_s12 = sld [smem:[#allocation3 + $0x24]] }
  0x79   :  { %2790 = sst [smem:[#allocation52_spill]] %s1535_s16 }
  0x7a   :  { %2791 = sst [smem:[#allocation53_spill]] %s1538_s23 }
  0x7b   :  { %2792 = sst [smem:[#allocation54_spill]] %s1547_s4 }
  0x7c   :  { %s1559_s23 = sld [smem:[#allocation3 + $0x4d]] }
  0x7d   :  { %s1567_s16 = sld [smem:[#allocation3 + $0x4e]] }
  0x7e   :  { %s1575_s4 = sld [smem:[#allocation3 + $0x4f]] }
  0x7f   :  { %2793 = sst [smem:[#allocation55_spill]] %s1589_s22 }
  0x80   :  { %2794 = sst [smem:[#allocation56_spill]] %s1595_s14 }
  0x81   :  { %2795 = sst [smem:[#allocation57_spill]] %s1601_s12 }
  0x82   :  { %s1607_s15 = sld [smem:[#allocation3 + $0x25]]  ;;  %v765_v52 = vstv %s1559_s23 }
  0x83   :  { %s1611_s11 = sld [smem:[#allocation3 + $0x52]] }
  0x84   :  { %s1621_s25 = sld [smem:[#allocation3 + $0x23]] }
  0x85   :  { %s1627_s28 = sld [smem:[#allocation3 + $0x27]] }
  0x86   :  { %s1631_s18 = sld [smem:[#allocation3 + $0x54]] }
  0x87   :  { %s1639_s19 = sld [smem:[#allocation3 + $0x22]] }
  0x88   :  { %2796 = sst [smem:[#allocation58_spill]] %s1607_s15 }
  0x89   :  { %2797 = sst [smem:[#allocation59_spill]] %s1611_s11 }
  0x8a   :  { %2798 = sst [smem:[#allocation60_spill]] %s1621_s25 }
  0x8b   :  { %2799 = sst [smem:[#allocation61_spill]] %s1627_s28 }
  0x8c   :  { %s1645_s9 = sld [smem:[#allocation3 + $0x26]]  ;;  %v858_v3 = vstv %s1631_s18 }
  0x8d   :  { %2800 = sst [smem:[#allocation62_spill]] %s1639_s19 }
  0x8e   :  { %s1649_s2 = sld [smem:[#allocation3 + $0x53]] }
  0x8f   :  { %s1655_s13 = sld [smem:[#allocation3 + $0x55]] }
  0x90   :  { %s1663_s10 = sld [smem:[#allocation3 + $0x56]] }
  0x91   :  { %s1669_s30 = sld [smem:[#allocation3 + $0x28]] }
  0x92   :  { %s2812_s29 = sld [smem:[#allocation42_spill]]  ;;  %v883_v0 = vstv %s1645_s9 }
  0x93   :  { %s2814_s24 = sld [smem:[#allocation41_spill]]  ;;  %v887_v58 = vmul.f32 %v883_v0, %v1425_v2 }
  0x94   :  { %s1681_s26 = sld [smem:[#allocation3 + $0x57]] }
  0x95   :  { %2807 = sst [smem:[#allocation63_spill]] %s1655_s13 }
  0x96   :  { %2810 = sst [smem:[#allocation64_spill]] %s1663_s10 }
  0x97   :  { %2811 = sst [smem:[#allocation65_spill]] %s1669_s30 }
  0x98   :  { %s1685_s30 = sld [smem:[#allocation3 + $0x58]] }
  0x99   :  { %s2818_s3 = sld [smem:[#allocation54_spill]] }
  0x9a   :  { %s1691_s6 = sld [smem:[#allocation3 + $0x2a]]  ;;  %v888_v49 = vstv %s1681_s26 }
  0x9b   :  { %s1699_s5 = sld [smem:[#allocation3 + $0x59]] }
  0x9c   :  { %s1705_s13 = sld [smem:[#allocation3 + $0x2b]] }
  0x9d   :  { %s1711_s20 = sld [smem:[#allocation3 + $0x2c]] }
  0x9e   :  { %2816 = sst [smem:[#allocation42_spill]] %s1685_s30 }
  0x9f   :  { %v790_v60 = vstv %s2818_s3  ;;  %s1717_s27 = sld [smem:[#allocation3 + $0x29]] }
  0xa0   :  { %s1723_s10 = sld [smem:[#allocation3 + $0x5a]]  ;;  %v792_v18 = vmul.f32 %v790_v60, %v1423_v1  ;;  %v794_v28 = vmul.f32 %v790_v60, %v1425_v2  ;;  %v791_v29 = vmul.f32 %v790_v60, %v1413_v57  ;;  %v793_v30 = vmul.f32 %v790_v60, %v1418_v59 }
  0xa1   :  { %s1729_s3 = sld [smem:[#allocation3 + $0x2d]]  ;;  %v885_v60 = vmul.f32 %v883_v0, %v1423_v1 }
  0xa2   :  { %s1735_s21 = sld [smem:[#allocation3 + $0x5e]]  ;;  %v801_v50 = vadd.f32 %v797_v9, %v792_v18  ;;  %v803_v36 = vadd.f32 %v799_v8, %v794_v28  ;;  %v800_v38 = vadd.f32 %v796_v35, %v791_v29  ;;  %v802_v39 = vadd.f32 %v798_v4, %v793_v30 }
  0xa3   :  { %s1743_s28 = sld [smem:[#allocation3 + $0x2e]]  ;;  %v890_v18 = vmul.f32 %v888_v49, %v1409_v55  ;;  %v892_v28 = vmul.f32 %v888_v49, %v1411_v56  ;;  %v884_v4 = vmul.f32 %v883_v0, %v1413_v57  ;;  %v886_v9 = vmul.f32 %v883_v0, %v1418_v59 }
  0xa4   :  { %s1749_s7 = sld [smem:[#allocation3 + $0x2f]]  ;;  %v889_v8 = vmul.f32 %v888_v49, %v1402_v46  ;;  %v891_v29 = vmul.f32 %v888_v49, %v1404_v47  ;;  %v1773_v30 = vsel %vm286_vm1, %v803_v36, %v801_v50  ;;  %v1787_v24 = vsel %vm286_vm1, %v802_v39, %v800_v38 }
  0xa5   :  { %s1753_s30 = sld [smem:[#allocation3 + $0x5b]]  ;;  %2828 = vst [vmem:[#allocation66_spill] sm:$0xff] %v1773_v30  ;;  %2831 = vst [vmem:[#allocation67_spill] sm:$0xff] %v1787_v24  ;;  %v894_v26 = vadd.f32 %v890_v18, %v885_v60  ;;  %v896_v20 = vadd.f32 %v892_v28, %v887_v58 }
  0xa6   :  { %s1757_s8 = sld [smem:[#allocation3 + $0x5c]]  ;;  %v893_v35 = vadd.f32 %v889_v8, %v884_v4  ;;  %v895_v40 = vadd.f32 %v891_v29, %v886_v9  ;;  %v326_v8 = vpop.permute.xlu0 %325  ;;  %v309_v29 = vpop.permute.xlu1 %308 }
  0xa7   :  { %s2824_s9 = sld [smem:[#allocation63_spill]]  ;;  %v976_v32 = vstv %s1729_s3  ;;  %v1810_v36 = vsel %vm286_vm1, %v896_v20, %v894_v26 }
  0xa8   :  { %s2825_s26 = sld [smem:[#allocation61_spill]]  ;;  %v981_v49 = vstv %s1735_s21  ;;  %v978_v38 = vmul.f32 %v976_v32, %v1423_v1  ;;  %v980_v58 = vmul.f32 %v976_v32, %v1425_v2  ;;  %v977_v18 = vmul.f32 %v976_v32, %v1413_v57  ;;  %2833 = vst [vmem:[#allocation68_spill] sm:$0xff] %v1810_v36 }
  0xa9   :  { %s1763_s12 = sld [smem:[#allocation3 + $0x5d]]  ;;  %v983_v60 = vmul.f32 %v981_v49, %v1409_v55  ;;  %v985_v39 = vmul.f32 %v981_v49, %v1411_v56  ;;  %v979_v28 = vmul.f32 %v976_v32, %v1418_v59  ;;  %v982_v4 = vmul.f32 %v981_v49, %v1402_v46 }
  0xaa   :  { %s2826_s15 = sld [smem:[#allocation64_spill]]  ;;  %v984_v9 = vmul.f32 %v981_v49, %v1404_v47  ;;  %v1821_v33 = vsel %vm286_vm1, %v895_v40, %v893_v35  ;;  %v343_v32 = vpop.permute.xlu0 %342  ;;  %v311_v43 = vpop.permute.xlu1 %310 }
  0xab   :  { %s1769_s25 = sld [smem:[#allocation3 + $0x5f]]  ;;  %2834 = vst [vmem:[#allocation69_spill] sm:$0xff] %v1821_v33  ;;  %v951_v22 = vstv %s1753_s30  ;;  %v987_v20 = vadd.f32 %v983_v60, %v978_v38  ;;  %v989_v26 = vadd.f32 %v985_v39, %v980_v58  ;;  %v986_v42 = vadd.f32 %v982_v4, %v977_v18 }
  0xac   :  { %s2827_s22 = sld [smem:[#allocation42_spill]]  ;;  %v988_v41 = vadd.f32 %v984_v9, %v979_v28  ;;  %v312_v40 = vsel %vm295_vm14, %v309_v29, %v311_v43  ;;  %v313_v35 = vsel %vm295_vm14, %v311_v43, %v309_v29 }
  0xad   :  { %s2829_s11 = sld [smem:[#allocation65_spill]]  ;;  %v1839_v60 = vmul.f32 %v1541_v10, %v313_v35  ;;  %v1842_v39 = vmul.f32 %v1544_v11, %v312_v40  ;;  %v1845_v18 = vsel %vm286_vm1, %v989_v26, %v987_v20 }
  0xae   :  { %s1778_s14 = sld [smem:[#allocation3 + $0x60]]  ;;  %2839 = vst [vmem:[#allocation73_spill] sm:$0xff] %v1845_v18  ;;  %v1849_v4 = vsel %vm286_vm1, %v988_v41, %v986_v42  ;;  %v1858_v40 = vpop.permute.xlu0 %291  ;;  %v328_v20 = vpop.permute.xlu1 %327 }
  0xaf   :  { %s1782_s17 = sld [smem:[#allocation3 + $0x30]]  ;;  %2836 = vst [vmem:[#allocation71_spill] sm:$0xff] %v1839_v60  ;;  %2838 = vst [vmem:[#allocation72_spill] sm:$0xff] %v1842_v39  ;;  %v329_v42 = vsel %vm320_vm15, %v326_v8, %v328_v20  ;;  %v1896_v35 = vmul.f32 %v404_v16, %v1839_v60  ;;  %v1931_v38 = vmul.f32 %v858_v3, %v1842_v39 }
  0xb0   :  { %s1790_s0 = sld [smem:[#allocation3 + $0x18]]  ;;  %2840 = vst [vmem:[#allocation74_spill] sm:$0xff] %v1849_v4  ;;  %v1939_v28 = vmul.f32 %v951_v22, %v1842_v39  ;;  %v1949_v49 = vmul.f32 %v951_v22, %v1839_v60 }
  0xb1   :  { %s1794_s19 = sld [smem:[#allocation3 + $0x49]]  ;;  %2855 = vst [vmem:[#allocation84_spill] sm:$0xff] %v1931_v38 }
  0xb2   :  { %s1797_s3 = sld [smem:[#allocation3 + $0x61]]  ;;  %v345_v9 = vpop.permute.xlu1 %344  ;;  %2857 = vst [vmem:[#allocation86_spill] sm:$0xff] %v1939_v28  ;;  %2858 = vst [vmem:[#allocation87_spill] sm:$0xff] %v1949_v49 }
  0xb3   :  { %s1807_s21 = sld [smem:[#allocation3 + $0x15]]  ;;  %v346_v27 = vsel %vm337_vm0, %v343_v32, %v345_v9 }
  0xb4   :  { %v1955_v0 = vmul.f32 %v1562_v15, %v346_v27  ;;  %s2860_s23 = sld [smem:[#allocation18_spill]] }
  0xb5   :  { %2830 = sst [smem:[#allocation41_spill]] %s1782_s17 }
  0xb6   :  { %v706_v44 = vstv %s1790_s0  ;;  %s2854_s17 = sld [smem:[#allocation23_spill]]  ;;  %v319_v4 = vpop.permute.xlu1 %318 }
  0xb7   :  { %v1836_v58 = vstv %s1794_s19  ;;  %v1853_v43 = vmul.f32 %v706_v44, %v1413_v57  ;;  %v1856_v29 = vmul.f32 %v706_v44, %v1423_v1  ;;  %v1861_v26 = vmul.f32 %v706_v44, %v1418_v59  ;;  %s2863_s18 = sld [smem:[#allocation19_spill]] }
  0xb8   :  { %2835 = vst [vmem:[#allocation70_spill] sm:$0xff] %v1836_v58  ;;  %v1864_v41 = vmul.f32 %v706_v44, %v1425_v2  ;;  %v1868_v57 = vmul.f32 %v1836_v58, %v1402_v46  ;;  %v1872_v1 = vmul.f32 %v1836_v58, %v1409_v55  ;;  %v330_v59 = vsel %vm320_vm15, %v328_v20, %v326_v8  ;;  %s2893_s0 = sld [smem:[#allocation25_spill]] }
  0xb9   :  { %2832 = sst [smem:[#allocation54_spill]] %s1807_s21  ;;  %2842 = vst [vmem:[#allocation75_spill] sm:$0xff] %v1853_v43  ;;  %2843 = vst [vmem:[#allocation76_spill] sm:$0xff] %v1856_v29  ;;  %v1881_v2 = vmul.f32 %v404_v16, %v1842_v39  ;;  %v1885_v46 = vmul.f32 %v1836_v58, %v1404_v47  ;;  %v1888_v44 = vmul.f32 %v1550_v12, %v330_v59  ;;  %v317_v59 = vpop.permute.xlu0 %316 }
  0xba   :  { %2845 = vst [vmem:[#allocation77_spill] sm:$0xff] %v1861_v26  ;;  %2846 = vst [vmem:[#allocation78_spill] sm:$0xff] %v1864_v41  ;;  %v1891_v55 = vmul.f32 %v1553_v13, %v329_v42  ;;  %v1901_v8 = vmul.f32 %v495_v25, %v1842_v39  ;;  %v1906_v20 = vmul.f32 %v495_v25, %v1839_v60  ;;  %s2865_s21 = sld [smem:[#allocation26_spill]] }
  0xbb   :  { %2847 = vst [vmem:[#allocation79_spill] sm:$0xff] %v1868_v57  ;;  %2848 = vst [vmem:[#allocation80_spill] sm:$0xff] %v1872_v1  ;;  %v1911_v47 = vmul.f32 %v588_v34, %v1842_v39  ;;  %v1916_v42 = vmul.f32 %v588_v34, %v1839_v60  ;;  %v1921_v16 = vmul.f32 %v765_v52, %v1842_v39  ;;  %v2864_v39 = vstv %s1567_s16  ;;  %s2875_s16 = sld [smem:[#allocation22_spill]] }
  0xbc   :  { %2849 = vst [vmem:[#allocation81_spill] sm:$0xff] %v1885_v46  ;;  %2850 = vst [vmem:[#allocation82_spill] sm:$0xff] %v1888_v44  ;;  %v1926_v25 = vmul.f32 %v765_v52, %v1839_v60  ;;  %v1936_v34 = vmul.f32 %v858_v3, %v1839_v60  ;;  %v347_v52 = vsel %vm337_vm0, %v345_v9, %v343_v32  ;;  %v2861_v50 = vstv %s2854_s17  ;;  %s2873_s17 = sld [smem:[#allocation21_spill]] }
  0xbd   :  { %2852 = vst [vmem:[#allocation83_spill] sm:$0xff] %v1891_v55  ;;  %v414_v17 = vmul.f32 %v412_v21, %v1891_v55  ;;  %v1952_v3 = vmul.f32 %v1556_v14, %v347_v52  ;;  %v413_v32 = vmul.f32 %v412_v21, %v1888_v44  ;;  %v505_v9 = vmul.f32 %v503_v31, %v1891_v55  ;;  %v334_v21 = vpop.permute.xlu0 %333  ;;  %s2906_s19 = sld [smem:[#allocation28_spill]] }
  0xbe   :  { %2856 = vst [vmem:[#allocation85_spill] sm:$0xff] %v1936_v34  ;;  %v504_v22 = vmul.f32 %v503_v31, %v1888_v44  ;;  %v598_v52 = vmul.f32 %v2861_v50, %v1891_v55  ;;  %v2862_v27 = vmov %v2861_v50  ;;  %v1976_v60 = vmul.f32 %v2864_v39, %v1891_v55  ;;  %s2909_s30 = sld [smem:[#allocation31_spill]] }
  0xbf   :  { %2859 = vst [vmem:[#allocation88_spill] sm:$0xff] %v1952_v3  ;;  %v597_v6 = vmul.f32 %v2862_v27, %v1888_v44  ;;  %v2866_v41 = vmov %v2864_v39  ;;  %v2868_v50 = vstv %s2824_s9  ;;  %v2872_v39 = vstv %s1757_s8  ;;  %s2885_s8 = sld [smem:[#allocation38_spill]] }
  0xc0   :  { %v1981_v31 = vmul.f32 %v2866_v41, %v1888_v44  ;;  %v1986_v46 = vmul.f32 %v2868_v50, %v1891_v55  ;;  %v2870_v27 = vmov %v2868_v50  ;;  %v1996_v1 = vmul.f32 %v2872_v39, %v1891_v55  ;;  %s2891_s9 = sld [smem:[#allocation24_spill]] }
  0xc1   :  { %v1991_v26 = vmul.f32 %v2870_v27, %v1888_v44  ;;  %v321_v29 = vsel %vm320_vm15, %v317_v59, %v319_v4  ;;  %v322_v41 = vsel %vm320_vm15, %v319_v4, %v317_v59  ;;  %v2876_v50 = vstv %s2860_s23  ;;  %s2910_s23 = sld [smem:[#allocation30_spill]] }
  0xc2   :  { %2867 = vst [vmem:[#allocation89_spill] sm:$0xff] %v1981_v31  ;;  %2869 = vst [vmem:[#allocation90_spill] sm:$0xff] %v1986_v46  ;;  %v424_v57 = vmul.f32 %v2876_v50, %v1955_v0  ;;  %v2877_v27 = vmov %v2872_v39  ;;  %v2011_v18 = vmul.f32 %v1550_v12, %v322_v41  ;;  %v2014_v39 = vmul.f32 %v1553_v13, %v321_v29 }
  0xc3   :  { %2871 = vst [vmem:[#allocation91_spill] sm:$0xff] %v1991_v26  ;;  %2874 = vst [vmem:[#allocation92_spill] sm:$0xff] %v1996_v1  ;;  %v2008_v43 = vmul.f32 %v2877_v27, %v1888_v44  ;;  %v2879_v55 = vmov %v2876_v50  ;;  %v2880_v4 = vstv %s2863_s18  ;;  %v2882_v27 = vstv %s2865_s21  ;;  %s2912_s18 = sld [smem:[#allocation34_spill]] }
  0xc4   :  { %v423_v58 = vmul.f32 %v2879_v55, %v1952_v3  ;;  %v515_v59 = vmul.f32 %v2880_v4, %v1955_v0  ;;  %v2881_v50 = vmov %v2880_v4  ;;  %v2028_v44 = vmul.f32 %v2882_v27, %v1955_v0  ;;  %v351_v55 = vpop.permute.xlu0 %350  ;;  %s2916_s21 = sld [smem:[#allocation37_spill]] }
  0xc5   :  { %2878 = vst [vmem:[#allocation93_spill] sm:$0xff] %v2008_v43  ;;  %v514_v56 = vmul.f32 %v2881_v50, %v1952_v3  ;;  %v2883_v12 = vmov %v2882_v27  ;;  %v2884_v13 = vstv %s1575_s4  ;;  %v336_v43 = vpop.permute.xlu1 %335  ;;  %v2886_v4 = vstv %s2873_s17  ;;  %s2904_s4 = sld [smem:[#allocation27_spill]] }
  0xc6   :  { %v2033_v41 = vmul.f32 %v2883_v12, %v1952_v3  ;;  %v2038_v29 = vmul.f32 %v2884_v13, %v1955_v0  ;;  %v411_v49 = vmul.f32 %v2886_v4, %v2014_v39  ;;  %v2887_v50 = vmov %v2886_v4  ;;  %s2920_s17 = sld [smem:[#allocation32_spill]] }
  0xc7   :  { %v410_v27 = vmul.f32 %v2887_v50, %v2011_v18  ;;  %v2888_v33 = vstv %s2875_s16  ;;  %v2889_v12 = vmov %v2884_v13  ;;  %v338_v13 = vsel %vm337_vm0, %v334_v21, %v336_v43 }
  0xc8   :  { %v502_v1 = vmul.f32 %v2888_v33, %v2014_v39  ;;  %v2052_v28 = vmul.f32 %v2889_v12, %v1952_v3  ;;  %v339_v26 = vsel %vm337_vm0, %v336_v43, %v334_v21  ;;  %v2892_v4 = vstv %s2826_s15  ;;  %s2905_s15 = sld [smem:[#allocation29_spill]] }
  0xc9   :  { %v2061_v36 = vmul.f32 %v2892_v4, %v1955_v0  ;;  %v2895_v50 = vmov %v2892_v4  ;;  %v2069_v12 = vmul.f32 %v1556_v14, %v339_v26  ;;  %v2072_v34 = vmul.f32 %v1562_v15, %v338_v13  ;;  %v294_v14 = vpop.permute.xlu0 %293 }
  0xca   :  { %2890 = vst [vmem:[#allocation94_spill] sm:$0xff] %v2052_v28  ;;  %v2066_v33 = vmul.f32 %v2895_v50, %v1952_v3  ;;  %v2897_v43 = vstv %s2875_s16  ;;  %v2898_v24 = vstv %s2885_s8  ;;  %v415_v46 = vadd.f32 %v413_v32, %v410_v27  ;;  %v353_v3 = vpop.permute.xlu1 %352  ;;  %s2922_s16 = sld [smem:[#allocation33_spill]] }
  0xcb   :  { %2894 = vst [vmem:[#allocation95_spill] sm:$0xff] %v2061_v36  ;;  %v501_v21 = vmul.f32 %v2897_v43, %v2011_v18  ;;  %v595_v4 = vmul.f32 %v2898_v24, %v2014_v39  ;;  %v416_v36 = vadd.f32 %v414_v17, %v411_v49  ;;  %v507_v38 = vadd.f32 %v505_v9, %v502_v1  ;;  %s2925_s8 = sld [smem:[#allocation35_spill]] }
  0xcc   :  { %2896 = vst [vmem:[#allocation96_spill] sm:$0xff] %v2066_v33  ;;  %v2899_v50 = vmov %v2898_v24  ;;  %v2900_v26 = vstv %s2891_s9  ;;  %v2902_v30 = vstv %s2893_s0  ;;  %v355_v17 = vsel %vm354_vm2, %v351_v55, %v353_v3  ;;  %s2926_s9 = sld [smem:[#allocation36_spill]] }
  0xcd   :  { %v594_v33 = vmul.f32 %v2899_v50, %v2011_v18  ;;  %v421_v15 = vmul.f32 %v2900_v26, %v2072_v34  ;;  %v2901_v13 = vmov %v2900_v26  ;;  %v512_v43 = vmul.f32 %v2902_v30, %v2072_v34  ;;  %s2936_s0 = sld [smem:[#allocation39_spill]] }
  0xce   :  { %v420_v28 = vmul.f32 %v2901_v13, %v2069_v12  ;;  %v2903_v31 = vmov %v2902_v30  ;;  %v356_v49 = vsel %vm354_vm2, %v353_v3, %v351_v55  ;;  %v296_v1 = vsel %vm295_vm14, %v1858_v40, %v294_v14 }
  0xcf   :  { %v511_v24 = vmul.f32 %v2903_v31, %v2069_v12  ;;  %v297_v32 = vsel %vm295_vm14, %v294_v14, %v1858_v40  ;;  %v2110_v9 = vmul.f32 %v1544_v11, %v296_v1  ;;  %v2112_v31 = vadd.f32 %v504_v22, %v501_v21  ;;  %v360_v40 = vpop.permute.xlu0 %359 }
  0xd0   :  { %v2107_v30 = vmul.f32 %v1541_v10, %v297_v32  ;;  %v2114_v27 = vadd.f32 %v598_v52, %v595_v4  ;;  %v2117_v3 = vmul.f32 %v1570_v19, %v355_v17  ;;  %v2120_v55 = vmul.f32 %v1578_v23, %v356_v49  ;;  %v362_v10 = vpop.permute.xlu1 %361 }
  0xd1   :  { %v426_v50 = vadd.f32 %v424_v57, %v421_v15  ;;  %v2122_v26 = vadd.f32 %v597_v6, %v594_v33  ;;  %v2907_v11 = vstv %s2904_s4  ;;  %v425_v21 = vadd.f32 %v423_v58, %v420_v28  ;;  %s2937_s4 = sld [smem:[#allocation40_spill]] }
  0xd2   :  { %v403_v14 = vmul.f32 %v2907_v11, %v2110_v9  ;;  %v2908_v22 = vmov %v2907_v11  ;;  %v517_v4 = vadd.f32 %v515_v59, %v512_v43  ;;  %v363_v13 = vsel %vm354_vm2, %v360_v40, %v362_v10 }
  0xd3   :  { %v402_v52 = vmul.f32 %v2908_v22, %v2107_v30  ;;  %v364_v6 = vsel %vm354_vm2, %v362_v10, %v360_v40  ;;  %v2911_v57 = vstv %s2905_s15  ;;  %v516_v15 = vadd.f32 %v514_v56, %v511_v24  ;;  %v368_v10 = vpop.permute.xlu0 %367 }
  0xd4   :  { %v494_v33 = vmul.f32 %v2911_v57, %v2110_v9  ;;  %v2138_v17 = vmul.f32 %v1570_v19, %v363_v13  ;;  %v2141_v49 = vmul.f32 %v1578_v23, %v364_v6  ;;  %v408_v58 = vadd.f32 %v1881_v2, %v403_v14  ;;  %v370_v24 = vpop.permute.xlu1 %369 }
  0xd5   :  { %v407_v28 = vadd.f32 %v1896_v35, %v402_v52  ;;  %v2913_v59 = vstv %s2906_s19  ;;  %v2915_v19 = vstv %s2909_s30  ;;  %v2917_v2 = vstv %s2910_s23  ;;  %s2940_s19 = sld [smem:[#allocation45_spill]] }
  0xd6   :  { %v455_v43 = vmul.f32 %v2913_v59, %v2120_v55  ;;  %v2914_v1 = vmov %v2913_v59  ;;  %v499_v56 = vadd.f32 %v1901_v8, %v494_v33  ;;  %v546_v23 = vmul.f32 %v2915_v19, %v2120_v55  ;;  %s2254_s30 = sld [smem:[#allocation3 + $0x46]] }
  0xd7   :  { %v454_v32 = vmul.f32 %v2914_v1, %v2117_v3  ;;  %v418_v40 = vadd.f32 %v416_v36, %v408_v58  ;;  %v458_v35 = vmul.f32 %v2917_v2, %v2141_v49  ;;  %v417_v11 = vadd.f32 %v415_v46, %v407_v28  ;;  %s2946_s23 = sld [smem:[#allocation48_spill]] }
  0xd8   :  { %v2918_v14 = vmov %v2917_v2  ;;  %v372_v52 = vsel %vm371_vm3, %v368_v10, %v370_v24  ;;  %v373_v8 = vsel %vm371_vm3, %v370_v24, %v368_v10  ;;  %v509_v13 = vadd.f32 %v507_v38, %v499_v56  ;;  %v379_v10 = vpop.permute.xlu1 %378  ;;  %v377_v2 = vpop.permute.xlu0 %376 }
  0xd9   :  { %v457_v22 = vmul.f32 %v2918_v14, %v2138_v17  ;;  %v2919_v6 = vstv %s2912_s18  ;;  %v2170_v33 = vmul.f32 %v1614_v45, %v372_v52  ;;  %v2173_v36 = vmul.f32 %v1617_v48, %v373_v8 }
  0xda   :  { %v549_v57 = vmul.f32 %v2919_v6, %v2141_v49  ;;  %v428_v46 = vadd.f32 %v426_v50, %v418_v40  ;;  %v2921_v58 = vstv %s2905_s15  ;;  %v427_v59 = vadd.f32 %v425_v21, %v417_v11  ;;  %s2938_s15 = sld [smem:[#allocation43_spill]] }
  0xdb   :  { %v493_v28 = vmul.f32 %v2921_v58, %v2107_v30  ;;  %v519_v1 = vadd.f32 %v517_v4, %v509_v13  ;;  %v2923_v38 = vmov %v2915_v19  ;;  %v2924_v19 = vstv %s2916_s21 }
  0xdc   :  { %v545_v56 = vmul.f32 %v2923_v38, %v2117_v3  ;;  %v587_v24 = vmul.f32 %v2924_v19, %v2110_v9  ;;  %v452_v14 = vadd.f32 %v1634_v63, %v428_v46  ;;  %v460_v52 = vadd.f32 %v458_v35, %v455_v43  ;;  %v385_v19 = vpop.permute.xlu0 %384 }
  0xdd   :  { %v459_v8 = vadd.f32 %v457_v22, %v454_v32  ;;  %v551_v50 = vadd.f32 %v549_v57, %v546_v23  ;;  %v380_v21 = vsel %vm371_vm3, %v377_v2, %v379_v10  ;;  %v381_v4 = vsel %vm371_vm3, %v379_v10, %v377_v2 }
  0xde   :  { %v2927_v40 = vstv %s2920_s17  ;;  %v2196_v63 = vmul.f32 %v1614_v45, %v380_v21  ;;  %v2199_v43 = vmul.f32 %v1617_v48, %v381_v4  ;;  %v2929_v32 = vstv %s2922_s16  ;;  %v387_v45 = vpop.permute.xlu1 %386  ;;  %s2952_s17 = sld [smem:[#allocation51_spill]] }
  0xdf   :  { %v465_v11 = vmul.f32 %v2927_v40, %v2173_v36  ;;  %v2928_v13 = vmov %v2927_v40  ;;  %v556_v23 = vmul.f32 %v2929_v32, %v2173_v36  ;;  %v498_v35 = vadd.f32 %v1906_v20, %v493_v28  ;;  %s2285_s16 = sld [smem:[#allocation3 + $0x47]] }
  0xe0   :  { %v464_v6 = vmul.f32 %v2928_v13, %v2170_v33  ;;  %v462_v22 = vadd.f32 %v460_v52, %v452_v14  ;;  %v451_v57 = vadd.f32 %v1658_v7, %v427_v59  ;;  %v543_v46 = vadd.f32 %v1677_v62, %v519_v1 }
  0xe1   :  { %v2930_v58 = vstv %s2912_s18  ;;  %v2931_v10 = vstv %s2925_s8  ;;  %v2933_v4 = vstv %s2926_s9  ;;  %v508_v20 = vadd.f32 %v2112_v31, %v498_v35  ;;  %s2950_s18 = sld [smem:[#allocation46_spill]]  ;;  %s1352_s8 = smov 48  }
  0xe2   :  { %v548_v38 = vmul.f32 %v2930_v58, %v2138_v17  ;;  %v468_v48 = vmul.f32 %v2931_v10, %v2199_v43  ;;  %v2932_v2 = vmov %v2931_v10  ;;  %v559_v40 = vmul.f32 %v2933_v4, %v2199_v43  ;;  %s2960_s9 = sld [smem:[#allocation52_spill]] }
  0xe3   :  { %v467_v21 = vmul.f32 %v2932_v2, %v2196_v63  ;;  %v389_v7 = vsel %vm388_vm4, %v385_v19, %v387_v45  ;;  %v390_v62 = vsel %vm388_vm4, %v387_v45, %v385_v19  ;;  %v2934_v28 = vmov %v2929_v32  ;;  %v396_v19 = vpop.permute.xlu1 %395  ;;  %v394_v2 = vpop.permute.xlu0 %393 }
  0xe4   :  { %v555_v59 = vmul.f32 %v2934_v28, %v2170_v33  ;;  %v2935_v1 = vmov %v2933_v4  ;;  %v2231_v52 = vmul.f32 %v1666_v51, %v389_v7  ;;  %v2234_v13 = vmul.f32 %v1674_v61, %v390_v62 }
  0xe5   :  { %v558_v14 = vmul.f32 %v2935_v1, %v2196_v63  ;;  %v470_v31 = vadd.f32 %v468_v48, %v465_v11  ;;  %v469_v32 = vadd.f32 %v467_v21, %v464_v6  ;;  %v461_v35 = vadd.f32 %v459_v8, %v451_v57 }
  0xe6   :  { %v561_v58 = vadd.f32 %v559_v40, %v556_v23  ;;  %v518_v10 = vadd.f32 %v516_v15, %v508_v20  ;;  %v592_v45 = vadd.f32 %v1911_v47, %v587_v24  ;;  %v553_v28 = vadd.f32 %v551_v50, %v543_v46 }
  0xe7   :  { %v472_v4 = vadd.f32 %v470_v31, %v462_v22  ;;  %v550_v7 = vadd.f32 %v548_v38, %v545_v56  ;;  %v560_v1 = vadd.f32 %v558_v14, %v555_v59  ;;  %v397_v11 = vsel %vm388_vm4, %v394_v2, %v396_v19 }
  0xe8   :  { %v398_v15 = vsel %vm388_vm4, %v396_v19, %v394_v2  ;;  %v2939_v47 = vstv %s2936_s0  ;;  %v471_v8 = vadd.f32 %v469_v32, %v461_v35  ;;  %v2245_v50 = vmul.f32 %v1666_v51, %v397_v11  ;;  %s2962_s0 = sld [smem:[#allocation49_spill]] }
  0xe9   :  { %v475_v24 = vmul.f32 %v2939_v47, %v2234_v13  ;;  %v2248_v56 = vmul.f32 %v1674_v61, %v398_v15  ;;  %v2941_v6 = vmov %v2939_v47  ;;  %v542_v22 = vadd.f32 %v1696_v37, %v518_v10 }
  0xea   :  { %v474_v23 = vmul.f32 %v2941_v6, %v2231_v52  ;;  %v563_v57 = vadd.f32 %v561_v58, %v553_v28  ;;  %v602_v46 = vadd.f32 %v2114_v27, %v592_v45  ;;  %v2942_v38 = vstv %s2814_s24 }
  0xeb   :  { %v605_v48 = vmul.f32 %v2942_v38, %v2072_v34  ;;  %v2943_v51 = vstv %s1512_s1  ;;  %v2944_v40 = vstv %s2812_s29  ;;  %v2947_v37 = vstv %s2937_s4  ;;  %s2954_s29 = sld [smem:[#allocation47_spill]] }
  0xec   :  { %v642_v21 = vmul.f32 %v2943_v51, %v2141_v49  ;;  %v478_v61 = vmul.f32 %v2944_v40, %v2248_v56  ;;  %v2945_v20 = vmov %v2944_v40  ;;  %v566_v59 = vmul.f32 %v2947_v37, %v2234_v13  ;;  %s2971_s4 = sld [smem:[#allocation56_spill]] }
  0xed   :  { %v477_v62 = vmul.f32 %v2945_v20, %v2245_v50  ;;  %v2948_v14 = vstv %s2938_s15  ;;  %v2949_v27 = vmov %v2947_v37  ;;  %v610_v10 = vadd.f32 %v2028_v44, %v605_v48  ;;  %s2972_s15 = sld [smem:[#allocation59_spill]] }
  0xee   :  { %v569_v31 = vmul.f32 %v2948_v14, %v2248_v56  ;;  %v565_v32 = vmul.f32 %v2949_v27, %v2231_v52  ;;  %v2951_v35 = vmov %v2948_v14  ;;  %v2953_v45 = vstv %s2940_s19  ;;  %s2976_s19 = sld [smem:[#allocation55_spill]] }
  0xef   :  { %v568_v58 = vmul.f32 %v2951_v35, %v2245_v50  ;;  %v639_v19 = vmul.f32 %v2953_v45, %v2120_v55  ;;  %v480_v2 = vadd.f32 %v478_v61, %v475_v24  ;;  %v479_v28 = vadd.f32 %v477_v62, %v474_v23 }
  0xf0   :  { %v571_v11 = vadd.f32 %v569_v31, %v566_v59  ;;  %v552_v15 = vadd.f32 %v550_v7, %v542_v22  ;;  %v612_v6 = vadd.f32 %v610_v10, %v602_v46  ;;  %v2955_v51 = vstv %s2946_s23  ;;  %s2977_s23 = sld [smem:[#allocation62_spill]] }
  0xf1   :  { %v570_v47 = vadd.f32 %v568_v58, %v565_v32  ;;  %v644_v38 = vadd.f32 %v642_v21, %v639_v19  ;;  %v652_v40 = vmul.f32 %v2955_v51, %v2199_v43  ;;  %v482_v44 = vadd.f32 %v480_v2, %v472_v4 }
  0xf2   :  { %v481_v48 = vadd.f32 %v479_v28, %v471_v8  ;;  %v2956_v20 = vstv %s2950_s18  ;;  %v2957_v24 = vstv %s2952_s17  ;;  %v562_v7 = vadd.f32 %v560_v1, %v552_v15  ;;  %s1354_s18 = smov 16   ;;  %s2988_s17 = sld [smem:[#allocation60_spill]] }
  0xf3   :  { %v649_v37 = vmul.f32 %v2956_v20, %v2173_v36  ;;  %v662_v23 = vmul.f32 %v2957_v24, %v2248_v56  ;;  %v636_v22 = vadd.f32 %v1714_v53, %v612_v6  ;;  %v2958_v46 = vstv %s2954_s29  ;;  %485 = vrot.lane.b32.xlu1 %v482_v44, %s1352_s8  ;;  %s2989_s29 = sld [smem:[#allocation57_spill]] }
  0xf4   :  { %v659_v21 = vmul.f32 %v2958_v46, %v2234_v13  ;;  %v2959_v61 = vstv %s2916_s21  ;;  %483 = vrot.lane.b32.xlu0 %v481_v48, %s1352_s8  ;;  %v573_v8 = vadd.f32 %v571_v11, %v563_v57  ;;  %v2961_v1 = vstv %s2814_s24  ;;  %s2967_s24 = sld [smem:[#allocation50_spill]] }
  0xf5   :  { %v586_v4 = vmul.f32 %v2959_v61, %v2107_v30  ;;  %v654_v62 = vadd.f32 %v652_v40, %v649_v37  ;;  %v604_v59 = vmul.f32 %v2961_v1, %v2069_v12  ;;  %v681_v14 = vstv %s2254_s30  ;;  %s2970_s21 = sld [smem:[#allocation53_spill]] }
  0xf6   :  { %v572_v53 = vadd.f32 %v570_v47, %v562_v7  ;;  %v664_v31 = vadd.f32 %v662_v23, %v659_v21  ;;  %v2963_v32 = vstv %s1512_s1  ;;  %v646_v58 = vadd.f32 %v644_v38, %v636_v22  ;;  %s1353_s1 = smov 32   ;;  %s2992_s8 = sld [smem:[#allocation58_spill]] }
  0xf7   :  { %v591_v27 = vadd.f32 %v1916_v42, %v586_v4  ;;  %v641_v35 = vmul.f32 %v2963_v32, %v2138_v17  ;;  %v2964_v10 = vmov %v2953_v45  ;;  %v2965_v57 = vmov %v2955_v51  ;;  %576 = vrot.lane.b32.xlu1 %v573_v8, %s1353_s1  ;;  %s3071_s30 = sld [smem:[#allocation97_spill]] }
  0xf8   :  { %v638_v45 = vmul.f32 %v2964_v10, %v2117_v3  ;;  %v651_v19 = vmul.f32 %v2965_v57, %v2196_v63  ;;  %v2966_v2 = vmov %v2957_v24  ;;  %v609_v15 = vadd.f32 %v2033_v41, %v604_v59  ;;  %574 = vrot.lane.b32.xlu0 %v572_v53, %s1353_s1 }
  0xf9   :  { %v661_v28 = vmul.f32 %v2966_v2, %v2245_v50  ;;  %v601_v11 = vadd.f32 %v2122_v26, %v591_v27  ;;  %v2968_v42 = vmov %v2956_v20  ;;  %v2969_v6 = vstv %s2960_s9 }
  0xfa   :  { %v648_v47 = vmul.f32 %v2968_v42, %v2170_v33  ;;  %v764_v38 = vmul.f32 %v2969_v6, %v2110_v9  ;;  %v656_v51 = vadd.f32 %v654_v62, %v646_v58  ;;  %v2973_v40 = vmov %v2958_v46 }
  0xfb   :  { %v658_v44 = vmul.f32 %v2973_v40, %v2231_v52  ;;  %v2974_v26 = vstv %s2962_s0  ;;  %v689_v41 = vstv %s2285_s16  ;;  %v611_v20 = vadd.f32 %v609_v15, %v601_v11  ;;  %s3072_s0 = sld [smem:[#allocation98_spill]] }
  0xfc   :  { %v772_v48 = vmul.f32 %v2974_v26, %v2014_v39  ;;  %v643_v37 = vadd.f32 %v641_v35, %v638_v45  ;;  %v769_v24 = vadd.f32 %v1921_v16, %v764_v38  ;;  %v2975_v23 = vstv %s2967_s24  ;;  %s1359_s24 = smov [#allocation9]  }
  0xfd   :  { %v782_v7 = vmul.f32 %v2975_v23, %v2072_v34  ;;  %v666_v22 = vadd.f32 %v664_v31, %v656_v51  ;;  %v653_v46 = vadd.f32 %v651_v19, %v648_v47  ;;  %v663_v21 = vadd.f32 %v661_v28, %v658_v44  ;;  %v2990_v44 = vld [vmem:[#allocation89_spill] sm:$0xff]  ;;  %s1117_s1 = sshll.u32 %s1359_s24, 4  ;;  %s1118_s1 = int_to_ptr.vmem [resolvable:$true] %s1117_s1 }
  0xfe   :  { %v777_v61 = vadd.f32 %v1976_v60, %v772_v48  ;;  %v635_v4 = vadd.f32 %v1738_v54, %v611_v20  ;;  %v2978_v8 = vstv %s2970_s21  ;;  %v2979_v1 = vstv %s2971_s4  ;;  %v2991_v48 = vld [vmem:[#allocation66_spill] sm:$0xff]  ;;  %p1320_p11 = scmp.lt.s32.totalorder %s1118_s1, %s1118_s1 }
  0xff   :  { %v816_v62 = vmul.f32 %v2978_v8, %v2120_v55  ;;  %v819_v16 = vmul.f32 %v2979_v1, %v2141_v49  ;;  %v2980_v59 = vstv %s2972_s15  ;;  %669 = vrot.lane.b32.xlu1 %v666_v22, %s1354_s18  ;;  %v787_v27 = vadd.f32 %v2038_v29, %v782_v7 }
 0x100   :  { %v829_v53 = vmul.f32 %v2980_v59, %v2199_v43  ;;  %v779_v31 = vadd.f32 %v777_v61, %v769_v24  ;;  %v2981_v60 = vstv %s1649_s2  ;;  %v2982_v54 = vmov %v2969_v6  ;;  %v2993_v24 = vld [vmem:[#allocation94_spill] sm:$0xff]  ;;  %s1355_s2 = smov 112  }
 0x101   :  { %v839_v32 = vmul.f32 %v2981_v60, %v2248_v56  ;;  %v763_v35 = vmul.f32 %v2982_v54, %v2107_v30  ;;  %v645_v58 = vadd.f32 %v643_v37, %v635_v4  ;;  %v2983_v10 = vstv %s2976_s19 }
 0x102   :  { %v826_v45 = vmul.f32 %v2983_v10, %v2173_v36  ;;  %v2984_v57 = vmov %v2974_v26  ;;  %v2985_v2 = vmov %v2975_v23  ;;  %v789_v29 = vadd.f32 %v787_v27, %v779_v31 }
 0x103   :  { %v771_v19 = vmul.f32 %v2984_v57, %v2011_v18  ;;  %v781_v28 = vmul.f32 %v2985_v2, %v2069_v12  ;;  %v2986_v11 = vstv %s2977_s23  ;;  %v768_v42 = vadd.f32 %v1926_v25, %v763_v35  ;;  %v3003_v2 = vld [vmem:[#allocation84_spill] sm:$0xff] }
 0x104   :  { %v836_v15 = vmul.f32 %v2986_v11, %v2234_v13  ;;  %v2987_v47 = vstv %s1763_s12  ;;  %v655_v38 = vadd.f32 %v653_v46, %v645_v58  ;;  %v821_v51 = vadd.f32 %v819_v16, %v816_v62 }
 0x105   :  { %v2373_v6 = vmul.f32 %v2987_v47, %v1955_v0  ;;  %v831_v40 = vadd.f32 %v829_v53, %v826_v45  ;;  %v776_v26 = vadd.f32 %v2990_v44, %v771_v19  ;;  %v813_v20 = vadd.f32 %v2991_v48, %v789_v29  ;;  %v3004_v29 = vld [vmem:[#allocation90_spill] sm:$0xff] }
 0x106   :  { %v841_v37 = vadd.f32 %v839_v32, %v836_v15  ;;  %v786_v23 = vadd.f32 %v2993_v24, %v781_v28  ;;  %v2994_v25 = vmov %v2979_v1  ;;  %v665_v22 = vadd.f32 %v663_v21, %v655_v38  ;;  %v3005_v15 = vld [vmem:[#allocation67_spill] sm:$0xff] }
 0x107   :  { %v818_v7 = vmul.f32 %v2994_v25, %v2138_v17  ;;  %v778_v61 = vadd.f32 %v776_v26, %v768_v42  ;;  %v2995_v4 = vmov %v2980_v59  ;;  %v2996_v8 = vmov %v2981_v60 }
 0x108   :  { %v828_v46 = vmul.f32 %v2995_v4, %v2196_v63  ;;  %v838_v62 = vmul.f32 %v2996_v8, %v2245_v50  ;;  %v823_v1 = vadd.f32 %v821_v51, %v813_v20  ;;  %v2997_v16 = vstv %s2970_s21  ;;  %667 = vrot.lane.b32.xlu0 %v665_v22, %s1354_s18  ;;  %v3007_v20 = vld [vmem:[#allocation95_spill] sm:$0xff]  ;;  %s1315_s21 = scalar_lea.vmem %s1118_s1, 256 }
 0x109   :  { %v815_v59 = vmul.f32 %v2997_v16, %v2117_v3  ;;  %v2998_v53 = vstv %s2988_s17  ;;  %v2999_v27 = vstv %s2989_s29  ;;  %v788_v21 = vadd.f32 %v786_v23, %v778_v61  ;;  %p1316_p10 = scmp.ne.s32.totalorder %s1118_s1, %s1315_s21  ;;  %p1321_p12 = scmp.lt.s32.totalorder %s1315_s21, %s1315_s21 }
 0x10a   :  { %v857_v31 = vmul.f32 %v2998_v53, %v2110_v9  ;;  %v865_v60 = vmul.f32 %v2999_v27, %v2014_v39  ;;  %v3000_v32 = vmov %v2983_v10  ;;  %v3001_v35 = vmov %v2986_v11 }
 0x10b   :  { %v825_v54 = vmul.f32 %v3000_v32, %v2170_v33  ;;  %v835_v58 = vmul.f32 %v3001_v35, %v2231_v52  ;;  %v3002_v10 = vstv %s2992_s8  ;;  %v833_v57 = vadd.f32 %v831_v40, %v823_v1  ;;  %v3016_v32 = vld [vmem:[#allocation85_spill] sm:$0xff]  ;;  %v3017_v35 = vld [vmem:[#allocation88_spill] sm:$0xff]  ;;  %p1322_p13 = por %p1321_p12, %p1320_p11 }
 0x10c   :  { %v875_v45 = vmul.f32 %v3002_v10, %v2072_v34  ;;  %v820_v19 = vadd.f32 %v818_v7, %v815_v59  ;;  %v862_v28 = vadd.f32 %v3003_v2, %v857_v31  ;;  %v870_v11 = vadd.f32 %v3004_v29, %v865_v60 }
 0x10d   :  { %v812_v42 = vadd.f32 %v3005_v15, %v788_v21  ;;  %v830_v47 = vadd.f32 %v828_v46, %v825_v54  ;;  %v840_v38 = vadd.f32 %v838_v62, %v835_v58  ;;  %v3006_v51 = vstv %s2827_s22  ;;  %s1356_s22 = smov 96   ;;  %p1323_p0 = pnand %p1322_p13, %p1316_p10 }
 0x10e   :  { %v912_v44 = vmul.f32 %v3006_v51, %v2141_v49  ;;  %v843_v26 = vadd.f32 %v841_v37, %v833_v57  ;;  %v872_v48 = vadd.f32 %v870_v11, %v862_v28  ;;  %v880_v40 = vadd.f32 %v3007_v20, %v875_v45  ;;  %v3019_v45 = vld [vmem:[#allocation68_spill] sm:$0xff]  ;;  %v3020_v28 = vld [vmem:[#allocation91_spill] sm:$0xff] }
 0x10f   :  { %v3008_v24 = vstv %s1699_s5  ;;  %v822_v25 = vadd.f32 %v820_v19, %v812_v42  ;;  %v3009_v7 = vstv %s2825_s26  ;;  %v3010_v61 = vstv %s1723_s10  ;;  %s2472_s5 = sld [smem:[#allocation3 + $0x48]] }
 0x110   :  { %v922_v23 = vmul.f32 %v3008_v24, %v2199_v43  ;;  %v909_v22 = vmul.f32 %v3009_v7, %v2120_v55  ;;  %v932_v4 = vmul.f32 %v3010_v61, %v2248_v56  ;;  %v3011_v46 = vmov %v2998_v53  ;;  %846 = vrot.lane.b32.xlu1 %v843_v26, %s1355_s2 }
 0x111   :  { %v856_v8 = vmul.f32 %v3011_v46, %v2107_v30  ;;  %v882_v37 = vadd.f32 %v880_v40, %v872_v48  ;;  %v3012_v62 = vstv %s2829_s11  ;;  %v3013_v16 = vmov %v2999_v27  ;;  %v3023_v40 = vld [vmem:[#allocation96_spill] sm:$0xff]  ;;  %s3037_s11 = sld [smem:[#allocation41_spill]] }
 0x112   :  { %v919_v1 = vmul.f32 %v3012_v62, %v2173_v36  ;;  %v864_v59 = vmul.f32 %v3013_v16, %v2011_v18  ;;  %v3014_v53 = vmov %v3002_v10  ;;  %v832_v27 = vadd.f32 %v830_v47, %v822_v25 }
 0x113   :  { %v874_v31 = vmul.f32 %v3014_v53, %v2069_v12  ;;  %v3015_v60 = vstv %s1717_s27  ;;  %v861_v54 = vadd.f32 %v3016_v32, %v856_v8  ;;  %v3018_v58 = vstv %s1763_s12  ;;  %v3031_v32 = vld [vmem:[#allocation92_spill] sm:$0xff]  ;;  %s2490_s12 = sld [smem:[#allocation3 + $0x17]] }
 0x114   :  { %v929_v21 = vmul.f32 %v3015_v60, %v2234_v13  ;;  %v970_v10 = vmul.f32 %v3018_v58, %v3017_v35  ;;  %v906_v57 = vadd.f32 %v3019_v45, %v882_v37  ;;  %v914_v19 = vadd.f32 %v912_v44, %v909_v22  ;;  %v3032_v45 = vld [vmem:[#allocation69_spill] sm:$0xff]  ;;  %s2498_s27 = sld [smem:[#allocation3 + $0x19]] }
 0x115   :  { %v924_v2 = vadd.f32 %v922_v23, %v919_v1  ;;  %v869_v29 = vadd.f32 %v3020_v28, %v864_v59  ;;  %v842_v11 = vadd.f32 %v840_v38, %v832_v27  ;;  %v3021_v42 = vmov %v3006_v51  ;;  %v3030_v59 = vld [vmem:[#allocation86_spill] sm:$0xff] }
 0x116   :  { %v934_v15 = vadd.f32 %v932_v4, %v929_v21  ;;  %v911_v47 = vmul.f32 %v3021_v42, %v2138_v17  ;;  %v3022_v51 = vmov %v3008_v24  ;;  %v916_v48 = vadd.f32 %v914_v19, %v906_v57 }
 0x117   :  { %v921_v26 = vmul.f32 %v3022_v51, %v2196_v63  ;;  %v871_v20 = vadd.f32 %v869_v29, %v861_v54  ;;  %v879_v24 = vadd.f32 %v3023_v40, %v874_v31  ;;  %v3024_v25 = vstv %s1691_s6  ;;  %844 = vrot.lane.b32.xlu0 %v842_v11, %s1355_s2  ;;  %s2507_s6 = sld [smem:[#allocation3 + $0x1a]] }
 0x118   :  { %v950_v44 = vmul.f32 %v3024_v25, %v2110_v9  ;;  %v3025_v23 = vmov %v3009_v7  ;;  %v3026_v38 = vmov %v3012_v62  ;;  %v3027_v61 = vstv %s1705_s13  ;;  %s2513_s13 = sld [smem:[#allocation3 + $0x4a]] }
 0x119   :  { %v908_v7 = vmul.f32 %v3025_v23, %v2117_v3  ;;  %v918_v22 = vmul.f32 %v3026_v38, %v2170_v33  ;;  %v958_v4 = vmul.f32 %v3027_v61, %v2014_v39  ;;  %v3028_v46 = vstv %s1711_s20  ;;  %s2524_s20 = sld [smem:[#allocation3 + $0x4b]] }
 0x11a   :  { %v968_v8 = vmul.f32 %v3028_v46, %v2072_v34  ;;  %v926_v37 = vadd.f32 %v924_v2, %v916_v48  ;;  %v881_v62 = vadd.f32 %v879_v24, %v871_v20  ;;  %v3029_v1 = vstv %s1723_s10  ;;  %s2479_s10 = sld [smem:[#allocation3 + $0x16]] }
 0x11b   :  { %v931_v16 = vmul.f32 %v3029_v1, %v2245_v50  ;;  %v955_v53 = vadd.f32 %v3030_v59, %v950_v44  ;;  %v913_v31 = vadd.f32 %v911_v47, %v908_v7  ;;  %v923_v27 = vadd.f32 %v921_v26, %v918_v22  ;;  %v3046_v59 = vld [vmem:[#allocation70_spill] sm:$0xff] }
 0x11c   :  { %v928_v21 = vmul.f32 %v3015_v60, %v2231_v52  ;;  %v963_v54 = vadd.f32 %v3031_v32, %v958_v4  ;;  %v936_v58 = vadd.f32 %v934_v15, %v926_v37  ;;  %v905_v57 = vadd.f32 %v3032_v45, %v881_v62  ;;  %v3044_v62 = vld [vmem:[#allocation93_spill] sm:$0xff] }
 0x11d   :  { %v973_v19 = vadd.f32 %v2373_v6, %v968_v8  ;;  %v3033_v2 = vstv %s1743_s28  ;;  %v3034_v11 = vstv %s1769_s25  ;;  %v3035_v47 = vstv %s1778_s14  ;;  %s3061_s14 = sld [smem:[#allocation54_spill]] }
 0x11e   :  { %v1002_v28 = vmul.f32 %v3033_v2, %v2120_v55  ;;  %v965_v29 = vadd.f32 %v963_v54, %v955_v53  ;;  %v1005_v42 = vmul.f32 %v3034_v11, %v2141_v49  ;;  %v1015_v51 = vmul.f32 %v3035_v47, %v2199_v43  ;;  %939 = vrot.lane.b32.xlu1 %v936_v58, %s1356_s22  ;;  %s2549_s25 = sld [smem:[#allocation3 + $0x4c]] }
 0x11f   :  { %v3036_v15 = vmov %v3024_v25  ;;  %v915_v6 = vadd.f32 %v913_v31, %v905_v57  ;;  %v933_v48 = vadd.f32 %v931_v16, %v928_v21  ;;  %v3038_v20 = vmov %v3027_v61  ;;  %v3042_v61 = vld [vmem:[#allocation87_spill] sm:$0xff]  ;;  %v3045_v16 = vld [vmem:[#allocation13_spill] sm:$0xff]  ;;  %v3047_v31 = vld [vmem:[#allocation73_spill] sm:$0xff] }
 0x120   :  { %v949_v26 = vmul.f32 %v3036_v15, %v2107_v30  ;;  %v957_v40 = vmul.f32 %v3038_v20, %v2011_v18  ;;  %v3039_v24 = vmov %v3028_v46  ;;  %v975_v44 = vadd.f32 %v973_v19, %v965_v29  ;;  %v3050_v15 = vld [vmem:[#allocation75_spill] sm:$0xff] }
 0x121   :  { %v967_v25 = vmul.f32 %v3039_v24, %v2069_v12  ;;  %v3040_v23 = vstv %s1749_s7  ;;  %v3041_v38 = vstv %s1797_s3  ;;  %v925_v46 = vadd.f32 %v923_v27, %v915_v6  ;;  %s2547_s7 = sld [smem:[#allocation3 + $0x1b]] }
 0x122   :  { %v1012_v7 = vmul.f32 %v3040_v23, %v2173_v36  ;;  %v1025_v22 = vmul.f32 %v3041_v38, %v2248_v56  ;;  %v954_v4 = vadd.f32 %v3042_v61, %v949_v26  ;;  %v3043_v8 = vstv %s3037_s11  ;;  %v3051_v26 = vld [vmem:[#allocation79_spill] sm:$0xff]  ;;  %v3059_v61 = vld [vmem:[#allocation78_spill] sm:$0xff] }
 0x123   :  { %v1022_v37 = vmul.f32 %v3043_v8, %v2234_v13  ;;  %v962_v1 = vadd.f32 %v3044_v62, %v957_v40  ;;  %v715_v53 = vmul.f32 %v3046_v59, %v3045_v16  ;;  %v999_v60 = vadd.f32 %v3047_v31, %v975_v44  ;;  %v3056_v44 = vld [vmem:[#allocation80_spill] sm:$0xff] }
 0x124   :  { %v1007_v21 = vadd.f32 %v1005_v42, %v1002_v28  ;;  %v1017_v32 = vadd.f32 %v1015_v51, %v1012_v7  ;;  %v972_v54 = vadd.f32 %v970_v10, %v967_v25  ;;  %v935_v27 = vadd.f32 %v933_v48, %v925_v46  ;;  %v3055_v25 = vld [vmem:[#allocation76_spill] sm:$0xff]  ;;  %v3057_v7 = vld [vmem:[#allocation77_spill] sm:$0xff]  ;;  %v3060_v46 = vld [vmem:[#allocation74_spill] sm:$0xff] }
 0x125   :  { %v964_v58 = vadd.f32 %v962_v1, %v954_v4  ;;  %v3048_v45 = vmov %v3034_v11  ;;  %v3049_v19 = vmov %v3035_v47  ;;  %v1027_v11 = vadd.f32 %v1025_v22, %v1022_v37 }
 0x126   :  { %v1004_v57 = vmul.f32 %v3048_v45, %v2138_v17  ;;  %v1014_v2 = vmul.f32 %v3049_v19, %v2196_v63  ;;  %v1009_v29 = vadd.f32 %v1007_v21, %v999_v60  ;;  %v699_v47 = vstv %s2472_s5  ;;  %937 = vrot.lane.b32.xlu0 %v935_v27, %s1356_s22 }
 0x127   :  { %v716_v28 = vadd.f32 %v3051_v26, %v3050_v15  ;;  %v974_v10 = vadd.f32 %v972_v54, %v964_v58  ;;  %v3052_v42 = vstv %s1743_s28  ;;  %v3053_v6 = vmov %v3040_v23  ;;  %s1357_s28 = smov 80   ;;  %v3065_v15 = vld [vmem:[#allocation71_spill] sm:$0xff] }
 0x128   :  { %v1001_v51 = vmul.f32 %v3052_v42, %v2117_v3  ;;  %v1011_v48 = vmul.f32 %v3053_v6, %v2170_v33  ;;  %v3054_v20 = vmov %v3041_v38  ;;  %v1019_v24 = vadd.f32 %v1017_v32, %v1009_v29  ;;  %v3058_v38 = vld [vmem:[#allocation81_spill] sm:$0xff] }
 0x129   :  { %v1024_v40 = vmul.f32 %v3054_v20, %v2245_v50  ;;  %v717_v23 = vadd.f32 %v3056_v44, %v3055_v25  ;;  %v718_v22 = vadd.f32 %v3058_v38, %v3057_v7  ;;  %v719_v4 = vadd.f32 %v715_v53, %v3059_v61  ;;  %v3068_v20 = vld [vmem:[#allocation83_spill] sm:$0xff] }
 0x12a   :  { %v998_v8 = vadd.f32 %v3060_v46, %v974_v10  ;;  %v1006_v37 = vadd.f32 %v1004_v57, %v1001_v51  ;;  %v1016_v62 = vadd.f32 %v1014_v2, %v1011_v48  ;;  %v3062_v1 = vstv %s3037_s11  ;;  %v3066_v10 = vld [vmem:[#allocation72_spill] sm:$0xff]  ;;  %v3067_v48 = vld [vmem:[#allocation82_spill] sm:$0xff] }
 0x12b   :  { %v1021_v16 = vmul.f32 %v3062_v1, %v2231_v52  ;;  %v1029_v59 = vadd.f32 %v1027_v11, %v1019_v24  ;;  %v686_v31 = vstv %s2479_s10  ;;  %v696_v60 = vstv %s2490_s12 }
 0x12c   :  { %v730_v53 = vstv %s2498_s27  ;;  %v1008_v21 = vadd.f32 %v1006_v37, %v998_v8  ;;  %v733_v54 = vstv %s2513_s13  ;;  %v740_v27 = vstv %s2507_s6 }
 0x12d   :  { %v1026_v32 = vadd.f32 %v1024_v40, %v1021_v16  ;;  %1032 = vrot.lane.b32.xlu1 %v1029_v59, %s1357_s28  ;;  %v3063_v58 = vstv %s3061_s14  ;;  %v724_v2 = vsel %vm286_vm1, %v718_v22, %v716_v28  ;;  %v725_v29 = vsel %vm286_vm1, %v719_v4, %v717_v23 }
 0x12e   :  { %v679_v45 = vmul.f32 %v3063_v58, %v2107_v30  ;;  %v3064_v57 = vmov %v3063_v58  ;;  %v1018_v11 = vadd.f32 %v1016_v62, %v1008_v21  ;;  %v682_v26 = vmul.f32 %v681_v14, %v3065_v15 }
 0x12f   :  { %v680_v19 = vmul.f32 %v3064_v57, %v2110_v9  ;;  %v683_v42 = vmul.f32 %v681_v14, %v3066_v10  ;;  %v743_v51 = vstv %s2524_s20  ;;  %v687_v6 = vmul.f32 %v686_v31, %v2011_v18 }
 0x130   :  { %v688_v30 = vmul.f32 %v686_v31, %v2014_v39  ;;  %v690_v9 = vmul.f32 %v689_v41, %v3067_v48  ;;  %v691_v28 = vmul.f32 %v689_v41, %v3068_v20  ;;  %v1028_v40 = vadd.f32 %v1026_v32, %v1018_v11 }
 0x131   :  { %v684_v24 = vadd.f32 %v682_v26, %v679_v45  ;;  %v685_v25 = vadd.f32 %v683_v42, %v680_v19  ;;  %v697_v44 = vmul.f32 %v696_v60, %v2069_v12  ;;  %v698_v7 = vmul.f32 %v696_v60, %v2072_v34 }
 0x132   :  { %v692_v23 = vadd.f32 %v690_v9, %v687_v6  ;;  %v693_v14 = vadd.f32 %v691_v28, %v688_v30  ;;  %v700_v18 = vmul.f32 %v699_v47, %v3017_v35  ;;  %1030 = vrot.lane.b32.xlu0 %v1028_v40, %s1357_s28  ;;  %v701_v39 = vmul.f32 %v699_v47, %v1955_v0 }
 0x133   :  { %v731_v38 = vmul.f32 %v730_v53, %v2117_v3  ;;  %v734_v22 = vmul.f32 %v733_v54, %v2138_v17  ;;  %v750_v41 = vstv %s2547_s7  ;;  %v753_v8 = vstv %s2549_s25 }
 0x134   :  { %v694_v61 = vadd.f32 %v692_v23, %v684_v24  ;;  %v695_v4 = vadd.f32 %v693_v14, %v685_v25  ;;  %v702_v46 = vadd.f32 %v700_v18, %v697_v44  ;;  %v703_v37 = vadd.f32 %v701_v39, %v698_v7 }
 0x135   :  { %v732_v12 = vmul.f32 %v730_v53, %v2120_v55  ;;  %v735_v62 = vmul.f32 %v733_v54, %v2141_v49  ;;  %v736_v34 = vadd.f32 %v734_v22, %v731_v38  ;;  %v741_v35 = vmul.f32 %v740_v27, %v2170_v33 }
 0x136   :  { %v704_v1 = vadd.f32 %v702_v46, %v694_v61  ;;  %v744_v0 = vmul.f32 %v743_v51, %v2196_v63  ;;  %v745_v3 = vmul.f32 %v743_v51, %v2199_v43  ;;  %v705_v47 = vadd.f32 %v703_v37, %v695_v4 }
 0x137   :  { %v742_v17 = vmul.f32 %v740_v27, %v2173_v36  ;;  %v751_v16 = vmul.f32 %v750_v41, %v2231_v52  ;;  %v754_v59 = vmul.f32 %v753_v8, %v2245_v50  ;;  %v752_v55 = vmul.f32 %v750_v41, %v2234_v13  ;;  %v3069_v13 = vld [vmem:[#allocation44_spill] sm:$0xff] }
 0x138   :  { %v728_v31 = vadd.f32 %v724_v2, %v704_v1  ;;  %v746_v60 = vadd.f32 %v744_v0, %v741_v35  ;;  %v755_v49 = vmul.f32 %v753_v8, %v2248_v56  ;;  %v729_v53 = vadd.f32 %v725_v29, %v705_v47 }
 0x139   :  { %v737_v21 = vadd.f32 %v735_v62, %v732_v12  ;;  %v747_v33 = vadd.f32 %v745_v3, %v742_v17  ;;  %v756_v32 = vadd.f32 %v754_v59, %v751_v16  ;;  %v2598_v2 = vshra.s32 %v1493_v5, 4 }
 0x13a   :  { %v738_v63 = vadd.f32 %v736_v34, %v728_v31  ;;  %v757_v54 = vadd.f32 %v755_v49, %v752_v55  ;;  %v2601_v56 = vshra.s32 %v3069_v13, 4  ;;  %v3070_v15 = vmov 0.0  }
 0x13b   :  { %v739_v43 = vadd.f32 %v737_v21, %v729_v53  ;;  %vm159_vm1 = vcmp.ge.s32.totalorder %v2598_v2, 2  ;;  %vm147_vm7 = vcmp.ge.s32.totalorder %v2598_v2, 3  ;;  %vm171_vm9 = vcmp.ge.s32.totalorder %v2598_v2, 1 }
 0x13c   :  { %v748_v58 = vadd.f32 %v746_v60, %v738_v63  ;;  %vm160_vm5 = vcmp.ge.s32.totalorder %v2601_v56, 2  ;;  %vm148_vm8 = vcmp.ge.s32.totalorder %v2601_v56, 3  ;;  %vm172_vm10 = vcmp.ge.s32.totalorder %v2601_v56, 1 }
 0x13d   :  { %v749_v45 = vadd.f32 %v747_v33, %v739_v43  ;;  %v1232_v26 = vsel %vm159_vm1, 1.0, %v3070_v15  ;;  %v1233_v10 = vsel %vm160_vm5, 1.0, %v3070_v15  ;;  %v1228_v6 = vsel %vm147_vm7, 1.0, %v3070_v15 }
 0x13e   :  { %v758_v36 = vadd.f32 %v756_v32, %v748_v58  ;;  %v1229_v30 = vsel %vm148_vm8, 1.0, %v3070_v15  ;;  %v1236_v48 = vsel %vm171_vm9, 1.0, %v3070_v15  ;;  %v1237_v9 = vsel %vm172_vm10, 1.0, %v3070_v15 }
 0x13f   :  { %v759_v27 = vadd.f32 %v757_v54, %v749_v45  ;;  %vm183_vm13 = vcmp.lt.s32.totalorder %v2598_v2, 15  ;;  %vm184_vm14 = vcmp.lt.s32.totalorder %v2601_v56, 15  ;;  %vm848_vm15 = vcmp.lt.s32.totalorder %v1493_v5, 112 }
 0x140   :  { %vm195_vm0 = vcmp.lt.s32.totalorder %v2598_v2, 14  ;;  %vm196_vm2 = vcmp.lt.s32.totalorder %v2601_v56, 14  ;;  %vm941_vm3 = vcmp.lt.s32.totalorder %v1493_v5, 96  ;;  %v1240_v37 = vsel %vm183_vm13, 1.0, %v3070_v15 }
 0x141   :  { %v1241_v12 = vsel %vm184_vm14, 1.0, %v3070_v15  ;;  %v1244_v1 = vsel %vm195_vm0, 1.0, %v3070_v15  ;;  %v1245_v35 = vsel %vm196_vm2, 1.0, %v3070_v15  ;;  %vm207_vm4 = vcmp.lt.s32.totalorder %v2598_v2, 13 }
 0x142   :  { %vm208_vm1 = vcmp.lt.s32.totalorder %v2601_v56, 13  ;;  %vm1034_vm5 = vcmp.lt.s32.totalorder %v1493_v5, 80  ;;  %v1248_v49 = vsel %vm207_vm4, 1.0, %v3070_v15  ;;  %v1044_v5 = vstv %s3072_s0 }
 0x143   :  { %v1249_v53 = vsel %vm208_vm1, 1.0, %v3070_v15 }
 0x165   :  { %v486_v52 = vpop.permute.xlu1 %485 }
 0x166   :  { %v484_v57 = vpop.permute.xlu0 %483 }
 0x167   :  { %v488_v20 = vsel %vm487_vm11, %v484_v57, %v486_v52  ;;  %v489_v28 = vsel %vm487_vm11, %v486_v52, %v484_v57 }
 0x168   :  { %v490_v7 = vmul.f32 %v1228_v6, %v489_v28  ;;  %v491_v18 = vmul.f32 %v1229_v30, %v488_v20  ;;  %v1358_v6 = vmov 1966171168  }
 0x169   :  { %v577_v50 = vpop.permute.xlu1 %576  ;;  %v1067_v30 = vunpack.c.l.s4 %v1358_v6 }
 0x16a   :  { %v575_v19 = vpop.permute.xlu0 %574 }
 0x16b   :  { %v579_v42 = vsel %vm578_vm6, %v575_v19, %v577_v50  ;;  %v580_v51 = vsel %vm578_vm6, %v577_v50, %v575_v19 }
 0x16c   :  { %v581_v25 = vmul.f32 %v1232_v26, %v580_v51  ;;  %v582_v44 = vmul.f32 %v1233_v10, %v579_v42 }
 0x16e   :  { %v583_v22 = vadd.f32 %v581_v25, %v490_v7  ;;  %v584_v41 = vadd.f32 %v582_v44, %v491_v18 }
 0x171   :  { %v670_v29 = vpop.permute.xlu1 %669 }
 0x17a   :  { %v668_v11 = vpop.permute.xlu0 %667 }
 0x17b   :  { %v672_v40 = vsel %vm671_vm12, %v668_v11, %v670_v29  ;;  %v673_v24 = vsel %vm671_vm12, %v670_v29, %v668_v11 }
 0x17c   :  { %v674_v39 = vmul.f32 %v1236_v48, %v673_v24  ;;  %v675_v38 = vmul.f32 %v1237_v9, %v672_v40  ;;  %v1068_v48 = vunpack.c.0.s8 %v1067_v30  ;;  %v3073_v9 = vlaneseq }
 0x17e   :  { %v676_v61 = vadd.f32 %v674_v39, %v583_v22  ;;  %v677_v4 = vadd.f32 %v675_v38, %v584_v41  ;;  %v1070_v20 = vshrl.u32 %v3073_v9, 7 }
 0x180   :  { %v760_v47 = vadd.f32 %v758_v36, %v676_v61  ;;  %v761_v17 = vadd.f32 %v759_v27, %v677_v4  ;;  %v1041_v27 = vstv %s3071_s30  ;;  %v1071_v44 = vsub.s32 %v1068_v48, %v1070_v20 }
 0x181   :  { %v1090_v7 = vsub.s32 0, %v1070_v20  ;;  %v1094_v18 = vsub.s32 1, %v1070_v20 }
 0x182   :  { %v847_v23 = vpop.permute.xlu1 %846 }
 0x189   :  { %v845_v14 = vpop.permute.xlu0 %844 }
 0x18a   :  { %v849_v62 = vsel %vm848_vm15, %v845_v14, %v847_v23  ;;  %v850_v34 = vsel %vm848_vm15, %v847_v23, %v845_v14 }
 0x18b   :  { %v851_v16 = vmul.f32 %v1240_v37, %v849_v62  ;;  %v852_v59 = vmul.f32 %v1241_v12, %v850_v34  ;;  %v1281_v12 = vld [vmem:[#allocation6] sm:$0xff]  ;;  %v1282_v34 = vld [vmem:[#allocation6 + $0x8] sm:$0xff] }
 0x18d   :  { %v853_v21 = vadd.f32 %v851_v16, %v760_v47  ;;  %v854_v33 = vadd.f32 %v852_v59, %v761_v17 }
 0x190   :  { %v940_v46 = vpop.permute.xlu1 %939 }
 0x198   :  { %v938_v8 = vpop.permute.xlu0 %937 }
 0x199   :  { %v942_v0 = vsel %vm941_vm3, %v938_v8, %v940_v46  ;;  %v943_v3 = vsel %vm941_vm3, %v940_v46, %v938_v8 }
 0x19a   :  { %v944_v31 = vmul.f32 %v1244_v1, %v942_v0  ;;  %v945_v60 = vmul.f32 %v1245_v35, %v943_v3 }
 0x19c   :  { %v946_v43 = vadd.f32 %v944_v31, %v853_v21  ;;  %v947_v58 = vadd.f32 %v945_v60, %v854_v33 }
 0x19f   :  { %v1033_v55 = vpop.permute.xlu1 %1032 }
 0x1a4   :  { %v1031_v32 = vpop.permute.xlu0 %1030 }
 0x1a5   :  { %v1035_v63 = vsel %vm1034_vm5, %v1031_v32, %v1033_v55  ;;  %v1036_v54 = vsel %vm1034_vm5, %v1033_v55, %v1031_v32 }
 0x1a6   :  { %v1037_v45 = vmul.f32 %v1248_v49, %v1035_v63  ;;  %v1038_v36 = vmul.f32 %v1249_v53, %v1036_v54 }
 0x1a8   :  { %v1039_v52 = vadd.f32 %v1037_v45, %v946_v43  ;;  %v1040_v57 = vadd.f32 %v1038_v36, %v947_v58 }
 0x1aa   :  { %v1042_v50 = vmul.f32 %v1041_v27, %v1039_v52  ;;  %v1043_v19 = vmul.f32 %v1041_v27, %v1040_v57 }
 0x1ac   :  { %v1045_v2 = vadd.f32 %v1044_v5, %v1042_v50  ;;  %v1046_v13 = vadd.f32 %v1044_v5, %v1043_v19 }
 0x1ae   :  { %v1047_v56 = vmax.f32 %v1045_v2, 0.0  ;;  %v1048_v29 = vmax.f32 %v1046_v13, 0.0 }
 0x1b0   :  { %v1250_v11 = vmul.f32 -1.442695, %v1047_v56  ;;  %v1251_v15 = vmul.f32 -1.442695, %v1048_v29 }
 0x1b2   :  { %1273 = vpow2.f32 %v1250_v11 }
 0x1b3   :  { %1275 = vpow2.f32 %v1251_v15 }
 0x1bf   :  { %v1274_v26 = vpop.eup %1273 }
 0x1c0   :  { %v1276_v10 = vpop.eup %1275  ;;  %v1055_v42 = vadd.f32 1.0, %v1274_v26 }
 0x1c1   :  { %v1056_v51 = vadd.f32 1.0, %v1276_v10 }
 0x1c2   :  { %1277 = vrcp.f32 %v1055_v42 }
 0x1c3   :  { %1279 = vrcp.f32 %v1056_v51 }
 0x1cf   :  { %v1278_v28 = vpop.eup %1277 }
 0x1d0   :  { %v1280_v40 = vpop.eup %1279  ;;  %v1061_v24 = vadd.f32 1.0, %v1278_v28 }
 0x1d1   :  { %v1062_v25 = vadd.f32 1.0, %v1280_v40 }
 0x1d3   :  { %v1065_v23 = vcombine.low %v1061_v24, %v1062_v25 }
 0x1d5   :  { %v1072_v14 = vrot.slane %v1065_v23, %v1071_v44 }
 0x1d7   :  { %v1073_v39 = vcombine.high %v1072_v14, %v1072_v14  ;;  %v1080_v38 = vrot.slane %v1072_v14, %v1071_v44 }
 0x1d9   :  { %v1087_v22 = vrot.slane %v1073_v39, %v1071_v44  ;;  %v1091_v41 = vrot.slane %v1080_v38, %v1090_v7  ;;  %v1095_v61 = vrot.slane %v1080_v38, %v1094_v18 }
 0x1db   :  { %v1099_v4 = vrot.slane %v1087_v22, %v1090_v7  ;;  %v1103_v46 = vrot.slane %v1087_v22, %v1094_v18  ;;  %v1104_v8 = vcombine.low %v1091_v41, %v1095_v61 }
 0x1dd   :  { %v1105_v37 = vcombine.low %v1099_v4, %v1103_v46  ;;  %v1108_v62 = vmul.f32 %v1281_v12, %v1104_v8 }
 0x1df   :  { %v1109_v1 = vmul.f32 %v1282_v34, %v1105_v37  ;;  %1110 = vst [vmem:[#allocation9] sm:$0xff] %v1108_v62 }
 0x1e1   :  { %1111 = vst [vmem:[#allocation9 + $0x8] sm:$0xff] %v1109_v1 }
 0x1e2   :  { %1326 = shalt.err (!%p1323_p0)
}
 0x1e3   :  { %s3074_s4 = smov 8   ;;  %s3075_s15 = smov 128  }
 0x1e4   :  { %s3076_s18 = sld [smem:[#allocation99_spill]] }
 0x1ea   :  { %1123 = dma.vmem_to_hbm [thread:$0]  %s1118_s1, 256, %s3076_s18, [#allocation8], %s3075_s15, %s3075_s15, %s3074_s4  }
 0x1eb   :  { %1339 = dma.done.wait [#allocation8], 256  }
 0x1ec   :  { %1340 = vsyncadd [#allocation8], 4294967040 }
 0x1ed   :  { %1127 = vsyncpa [#allocation7], 1 }
 0x1ee   :  { %1128 = vsyncpa [#allocation8], 1 }

</bundles_post_ra>
